<compile_context>
chip_gen: v7x
topology: tpu7x:2x2x1
jax: 0.10.0
libtpu: 0.0.40
codegen_flags: <defaults>
</compile_context>

<pallas_src>
import functools

import jax
import jax.numpy as jnp
from jax import lax
from jax.experimental import pallas as pl
from jax.experimental.pallas import tpu as pltpu

EPS = 1e-5


# ---------------------------------------------------------------------------
# Kernels: one grid step == one sample; refs are (C, L) blocks (batch squeezed)
# ---------------------------------------------------------------------------
def _stage1_kernel(x_ref, w1_ref, h1_ref, s_ref, ss_ref, *, compute_dtype):
    """h1 = conv1(x) (1x1) and per-sample sum / sum-of-squares of h1."""
    h1 = jnp.dot(w1_ref[...].astype(compute_dtype),
                 x_ref[...].astype(compute_dtype),
                 preferred_element_type=jnp.float32)            # (Cmid, L) f32
    h1_ref[...] = h1.astype(h1_ref.dtype)
    s_ref[...] = jnp.sum(h1, axis=1, keepdims=True)
    ss_ref[...] = jnp.sum(h1 * h1, axis=1, keepdims=True)


def _stage2_kernel(h1_ref, w2_ref, sc_ref, sh_ref, h2_ref, s_ref, ss_ref, *,
                   compute_dtype):
    """a1 = relu(bn1(h1)); h2 = conv2(a1) (k=3, pad=1) as one K=3C matmul."""
    h1 = h1_ref[...].astype(jnp.float32)                        # (Cmid, L)
    a1 = jnp.maximum(h1 * sc_ref[...] + sh_ref[...], 0.0).astype(compute_dtype)

    c, l = a1.shape
    # Hoisted lane-index mask, reused for both shifted taps.
    col = lax.broadcasted_iota(jnp.int32, (c, l), 1)
    zero = jnp.zeros((), compute_dtype)
    # a_prev[:, j] = a1[:, j-1]; a_next[:, j] = a1[:, j+1]; zero padding at the
    # sequence edges — the wrapped lanes are exactly the masked ones.
    a_prev = jnp.where(col == 0, zero, pltpu.roll(a1, shift=1, axis=1))
    a_next = jnp.where(col == l - 1, zero, pltpu.roll(a1, shift=l - 1, axis=1))

    # Fuse the three k=3 taps into a single MXU matmul with K = 3*Cmid.
    h_cat = jnp.concatenate([a_prev, a1, a_next], axis=0)       # (3*Cmid, L)
    h2 = jnp.dot(w2_ref[...].astype(compute_dtype), h_cat,
                 preferred_element_type=jnp.float32)            # (Cmid, L) f32
    h2_ref[...] = h2.astype(h2_ref.dtype)
    s_ref[...] = jnp.sum(h2, axis=1, keepdims=True)
    ss_ref[...] = jnp.sum(h2 * h2, axis=1, keepdims=True)


def _stage3_kernel(h2_ref, w3_ref, sc_ref, sh_ref, a2_ref, s_ref, ss_ref, *,
                   compute_dtype):
    """a2 = relu(bn2(h2)); store a2; compute conv3(a2) only for its statistics."""
    h2 = h2_ref[...].astype(jnp.float32)
    a2 = jnp.maximum(h2 * sc_ref[...] + sh_ref[...], 0.0).astype(compute_dtype)
    a2_ref[...] = a2
    # h3 is recomputed bit-identically in stage 4 from the stored a2, so these
    # statistics describe exactly the tensor that will be normalized.
    h3 = jnp.dot(w3_ref[...].astype(compute_dtype), a2,
                 preferred_element_type=jnp.float32)            # (C4, L) f32
    s_ref[...] = jnp.sum(h3, axis=1, keepdims=True)
    ss_ref[...] = jnp.sum(h3 * h3, axis=1, keepdims=True)


def _stage4_kernel(a2_ref, x_ref, w3_ref, sc_ref, sh_ref, out_ref, *,
                   compute_dtype):
    """h3 = conv3(a2); out = relu(bn3(h3) + x).  Residual x read only here."""
    h3 = jnp.dot(w3_ref[...].astype(compute_dtype),
                 a2_ref[...].astype(compute_dtype),
                 preferred_element_type=jnp.float32)            # (C4, L) f32
    h3 = h3 * sc_ref[...] + sh_ref[...]
    out_ref[...] = jnp.maximum(h3 + x_ref[...].astype(jnp.float32),
                               0.0).astype(out_ref.dtype)


# ---------------------------------------------------------------------------
# Wrapper
# ---------------------------------------------------------------------------
def _compiler_params():
    return pltpu.CompilerParams(
        dimension_semantics=("parallel",),        # megacore sharding on v7x
        vmem_limit_bytes=48 * 1024 * 1024)        # explicit; safely < 64MiB v7x


def _cost(flops, nbytes):
    return pl.CostEstimate(flops=int(flops), transcendentals=0,
                           bytes_accessed=int(nbytes))


def _fold_bn(part_sum, part_sumsq, gamma, beta, count):
    """Combine per-tile partial sums exactly once (f32); fold BN to scale/shift."""
    total = jnp.sum(part_sum, axis=0)[:, 0]        # (C,)
    total_sq = jnp.sum(part_sumsq, axis=0)[:, 0]
    mean = total / count
    var = total_sq / count - mean * mean           # biased var (training-mode BN)
    scale = gamma * lax.rsqrt(var + EPS)
    shift = beta - mean * scale
    return scale[:, None], shift[:, None]          # (C, 1): broadcasts over lanes


def bottleneck1d_pallas(x_ncl, params, *, compute_dtype=jnp.bfloat16):
    """BottleNeck1D forward (training-mode BN). x_ncl: (N, Cin, L), PyTorch layout.

    compute_dtype: dtype fed to the MXU and used for HBM intermediates (bf16 on
    v6e/v7x for peak MXU rate and half the intermediate traffic; float32 for a
    bit-accurate path).  BN statistics / normalization always run in f32.
    """
    n, cin, seq = x_ncl.shape
    w1 = params["conv1"]            # (Cmid, Cin, 1)
    w2 = params["conv2"]            # (Cmid, Cmid, 3)
    w3 = params["conv3"]            # (C4,  Cmid, 1)
    cmid = w1.shape[0]
    c4 = w3.shape[0]
    assert cin == c4, "downsample is None -> residual needs inplanes == 4*outplanes"

    cdt = jnp.dtype(compute_dtype)
    csz = cdt.itemsize
    count = jnp.float32(n * seq)

    w1_m = w1[:, :, 0]                                             # (Cmid, Cin)
    w2_cat = jnp.concatenate([w2[:, :, 0], w2[:, :, 1], w2[:, :, 2]], axis=1)
    w3_m = w3[:, :, 0]                                             # (C4, Cmid)

    def sample_spec(c, l):          # per-sample block, batch dim squeezed
        return pl.BlockSpec((None, c, l), lambda b: (b, 0, 0))

    def full_spec(r, c):            # whole array, resident across grid steps
        return pl.BlockSpec((r, c), lambda b: (0, 0))

    def stat_shape(c):
        return jax.ShapeDtypeStruct((n, c, 1), jnp.float32)

    # --------------- stage 1: conv1 + stats(h1) -----------------------------
    h1, s1, ss1 = pl.pallas_call(
        functools.partial(_stage1_kernel, compute_dtype=cdt),
        grid=(n,),
        in_specs=[sample_spec(cin, seq), full_spec(cmid, cin)],
        out_specs=[sample_spec(cmid, seq), sample_spec(cmid, 1),
                   sample_spec(cmid, 1)],
        out_shape=[jax.ShapeDtypeStruct((n, cmid, seq), cdt),
                   stat_shape(cmid), stat_shape(cmid)],
        compiler_params=_compiler_params(),
        cost_estimate=_cost(2 * n * cmid * cin * seq,
                            n * cin * seq * 4 + cmid * cin * csz
                            + n * cmid * seq * csz),
    )(x_ncl, w1_m)
    scale1, shift1 = _fold_bn(s1, ss1, params["bn1_gamma"], params["bn1_beta"],
                              count)

    # --------------- stage 2: bn1+relu, conv2 (fused k=3), stats(h2) --------
    h2, s2, ss2 = pl.pallas_call(
        functools.partial(_stage2_kernel, compute_dtype=cdt),
        grid=(n,),
        in_specs=[sample_spec(cmid, seq), full_spec(cmid, 3 * cmid),
                  full_spec(cmid, 1), full_spec(cmid, 1)],
        out_specs=[sample_spec(cmid, seq), sample_spec(cmid, 1),
                   sample_spec(cmid, 1)],
        out_shape=[jax.ShapeDtypeStruct((n, cmid, seq), cdt),
                   stat_shape(cmid), stat_shape(cmid)],
        compiler_params=_compiler_params(),
        cost_estimate=_cost(2 * n * cmid * 3 * cmid * seq,
                            2 * n * cmid * seq * csz + 3 * cmid * cmid * csz),
    )(h1, w2_cat, scale1, shift1)
    scale2, shift2 = _fold_bn(s2, ss2, params["bn2_gamma"], params["bn2_beta"],
                              count)

    # --------------- stage 3: bn2+relu -> a2, stats(conv3(a2)) --------------
    a2, s3, ss3 = pl.pallas_call(
        functools.partial(_stage3_kernel, compute_dtype=cdt),
        grid=(n,),
        in_specs=[sample_spec(cmid, seq), full_spec(c4, cmid),
                  full_spec(cmid, 1), full_spec(cmid, 1)],
        out_specs=[sample_spec(cmid, seq), sample_spec(c4, 1),
                   sample_spec(c4, 1)],
        out_shape=[jax.ShapeDtypeStruct((n, cmid, seq), cdt),
                   stat_shape(c4), stat_shape(c4)],
        compiler_params=_compiler_params(),
        cost_estimate=_cost(2 * n * c4 * cmid * seq,
                            2 * n * cmid * seq * csz + c4 * cmid * csz),
    )(h2, w3_m, scale2, shift2)
    scale3, shift3 = _fold_bn(s3, ss3, params["bn3_gamma"], params["bn3_beta"],
                              count)

    # --------------- stage 4: conv3, bn3, residual add, relu ----------------
    out = pl.pallas_call(
        functools.partial(_stage4_kernel, compute_dtype=cdt),
        grid=(n,),
        in_specs=[sample_spec(cmid, seq), sample_spec(cin, seq),
                  full_spec(c4, cmid), full_spec(c4, 1), full_spec(c4, 1)],
        out_specs=sample_spec(c4, seq),
        out_shape=jax.ShapeDtypeStruct((n, c4, seq), x_ncl.dtype),
        compiler_params=_compiler_params(),
        cost_estimate=_cost(2 * n * c4 * cmid * seq,
                            n * cmid * seq * csz + n * cin * seq * 4
                            + n * c4 * seq * 4 + c4 * cmid * csz),
    )(a2, x_ncl, w3_m, scale3, shift3)
    return out


# ---------------------------------------------------------------------------
# Pure-JAX reference (training-mode BN, matches the PyTorch forward)
# ---------------------------------------------------------------------------
def _conv1d_ref(x_ncl, w_oik, stride=1, padding=0):
    return lax.conv_general_dilated(
        x_ncl, w_oik, (stride,), [(padding, padding)],
        dimension_numbers=("NCH", "OIH", "NCH"))


def _bn_ref(y_ncl, gamma, beta):
    mean = jnp.mean(y_ncl, axis=(0, 2), keepdims=True)
    var = jnp.mean((y_ncl - mean) ** 2, axis=(0, 2), keepdims=True)
    return (y_ncl - mean) * lax.rsqrt(var + EPS) * gamma.reshape(1, -1, 1) \
        + beta.reshape(1, -1, 1)


def bottleneck1d_ref(x, p):
    out = _conv1d_ref(x, p["conv1"])
    out = jax.nn.relu(_bn_ref(out, p["bn1_gamma"], p["bn1_beta"]))
    out = _conv1d_ref(out, p["conv2"], stride=1, padding=1)
    out = jax.nn.relu(_bn_ref(out, p["bn2_gamma"], p["bn2_beta"]))
    out = _conv1d_ref(out, p["conv3"])
    out = _bn_ref(out, p["bn3_gamma"], p["bn3_beta"])
    return jax.nn.relu(out + x)


if __name__ == "__main__":
    # Small but TPU-friendly shapes: the lane axis (L) is 128 and the residual
    # channel count (inplanes = 4*outplanes) is 128 -> lane-dense output tiles.
    N, outplanes, L = 2, 32, 128
    inplanes = 4 * outplanes

    key = jax.random.PRNGKey(0)
    ks = jax.random.split(key, 10)
    params = {
        "conv1": 0.1 * jax.random.normal(ks[0], (outplanes, inplanes, 1), jnp.float32),
        "conv2": 0.1 * jax.random.normal(ks[1], (outplanes, outplanes, 3), jnp.float32),
        "conv3": 0.1 * jax.random.normal(ks[2], (4 * outplanes, outplanes, 1), jnp.float32),
        "bn1_gamma": 1.0 + 0.1 * jax.random.normal(ks[3], (outplanes,), jnp.float32),
        "bn1_beta": 0.1 * jax.random.normal(ks[4], (outplanes,), jnp.float32),
        "bn2_gamma": 1.0 + 0.1 * jax.random.normal(ks[5], (outplanes,), jnp.float32),
        "bn2_beta": 0.1 * jax.random.normal(ks[6], (outplanes,), jnp.float32),
        "bn3_gamma": 1.0 + 0.1 * jax.random.normal(ks[7], (4 * outplanes,), jnp.float32),
        "bn3_beta": 0.1 * jax.random.normal(ks[8], (4 * outplanes,), jnp.float32),
    }
    x = jax.random.normal(ks[9], (N, inplanes, L), jnp.float32)

    fwd = jax.jit(bottleneck1d_pallas, static_argnames=("compute_dtype",))
    ref = jax.block_until_ready(bottleneck1d_ref(x, params))

    # f32 compute path: tight check against the XLA reference.
    out_f32 = jax.block_until_ready(fwd(x, params, compute_dtype=jnp.float32))
    assert out_f32.shape == (N, inplanes, L), out_f32.shape
    assert jnp.allclose(out_f32, ref, rtol=2e-4, atol=2e-4), \
        float(jnp.max(jnp.abs(out_f32 - ref)))

    # bf16 MXU-input path (perf configuration for v6e/v7x).  BN math stays f32,
    # so only matmul-input rounding differs -> loose tolerance vs f32 reference.
    out_bf16 = jax.block_until_ready(fwd(x, params, compute_dtype=jnp.bfloat16))
    assert out_bf16.shape == (N, inplanes, L), out_bf16.shape
    assert jnp.allclose(out_bf16, ref, rtol=1e-1, atol=1e-1), \
        float(jnp.max(jnp.abs(out_bf16 - ref)))

    print("KERNEL_OK")
</pallas_src>

<mosaic_0001>
module attributes {stable_mosaic.version = 11 : i64} {
  func.func @_stage1_kernel(%arg0: i32, %arg1: memref<1x128x128xf32, #tpu.memory_space<vmem>>, %arg2: memref<32x128xf32, #tpu.memory_space<vmem>>, %arg3: memref<1x32x128xf32, #tpu.memory_space<vmem>>, %arg4: memref<1x32x1xf32, #tpu.memory_space<vmem>>, %arg5: memref<1x32x1xf32, #tpu.memory_space<vmem>>) attributes {dimension_semantics = [#tpu.dimension_semantics<parallel>], iteration_bounds = array<i64: 2>, scalar_prefetch = 0 : i64, scratch_operands = 0 : i64, tpu.core_type = #tpu.core_type<tc>, window_params = [{transform_indices = @transform_0, window_bounds = array<i64: 1, 128, 128>}, {pipeline_mode = #tpu.pipeline_mode<synchronous>, transform_indices = @transform_1, window_bounds = array<i64: 32, 128>}, {transform_indices = @transform_2, window_bounds = array<i64: 1, 32, 128>}, {transform_indices = @transform_3, window_bounds = array<i64: 1, 32, 1>}, {transform_indices = @transform_4, window_bounds = array<i64: 1, 32, 1>}]} {
    %c0 = arith.constant 0 : index
    %c0_0 = arith.constant 0 : index
    %0 = vector.load %arg2[%c0, %c0_0] : memref<32x128xf32, #tpu.memory_space<vmem>>, vector<32x128xf32>
    %c0_1 = arith.constant 0 : index
    %c0_2 = arith.constant 0 : index
    %c0_3 = arith.constant 0 : index
    %1 = vector.load %arg1[%c0_1, %c0_2, %c0_3] : memref<1x128x128xf32, #tpu.memory_space<vmem>>, vector<1x128x128xf32>
    %2 = vector.shape_cast %1 : vector<1x128x128xf32> to vector<128x128xf32>
    %cst = arith.constant dense<0.000000e+00> : vector<32x128xf32>
    %3 = tpu.matmul %0, %2, %cst {dimension_numbers = #tpu.dot_dimension_numbers<[1], [0], [0], [1], [0, 0, 1, 1], [], []>} : vector<32x128xf32>, vector<128x128xf32>, vector<32x128xf32> -> vector<32x128xf32>
    %c0_4 = arith.constant 0 : index
    %c0_5 = arith.constant 0 : index
    %c0_6 = arith.constant 0 : index
    %4 = vector.load %arg3[%c0_4, %c0_5, %c0_6] : memref<1x32x128xf32, #tpu.memory_space<vmem>>, vector<1x32x128xf32>
    %5 = vector.shape_cast %4 : vector<1x32x128xf32> to vector<32x128xf32>
    %6 = vector.shape_cast %3 : vector<32x128xf32> to vector<1x32x128xf32>
    tpu.vector_store %arg3[%c0_4, %c0_5, %c0_6], %6 {strides = array<i32>} : memref<1x32x128xf32, #tpu.memory_space<vmem>>, vector<1x32x128xf32>,
    %cst_7 = arith.constant dense<0.000000e+00> : vector<32xf32>
    %7 = vector.multi_reduction <add>, %3, %cst_7 [1] : vector<32x128xf32> to vector<32xf32>
    %8 = vector.shape_cast %7 : vector<32xf32> to vector<32x1xf32>
    %c0_8 = arith.constant 0 : index
    %c0_9 = arith.constant 0 : index
    %c0_10 = arith.constant 0 : index
    %9 = vector.load %arg4[%c0_8, %c0_9, %c0_10] : memref<1x32x1xf32, #tpu.memory_space<vmem>>, vector<1x32x1xf32>
    %10 = vector.shape_cast %9 : vector<1x32x1xf32> to vector<32x1xf32>
    %11 = vector.shape_cast %8 : vector<32x1xf32> to vector<1x32x1xf32>
    tpu.vector_store %arg4[%c0_8, %c0_9, %c0_10], %11 {strides = array<i32>} : memref<1x32x1xf32, #tpu.memory_space<vmem>>, vector<1x32x1xf32>,
    %12 = arith.mulf %3, %3 : vector<32x128xf32>
    %cst_11 = arith.constant dense<0.000000e+00> : vector<32xf32>
    %13 = vector.multi_reduction <add>, %12, %cst_11 [1] : vector<32x128xf32> to vector<32xf32>
    %14 = vector.shape_cast %13 : vector<32xf32> to vector<32x1xf32>
    %c0_12 = arith.constant 0 : index
    %c0_13 = arith.constant 0 : index
    %c0_14 = arith.constant 0 : index
    %15 = vector.load %arg5[%c0_12, %c0_13, %c0_14] : memref<1x32x1xf32, #tpu.memory_space<vmem>>, vector<1x32x1xf32>
    %16 = vector.shape_cast %15 : vector<1x32x1xf32> to vector<32x1xf32>
    %17 = vector.shape_cast %14 : vector<32x1xf32> to vector<1x32x1xf32>
    tpu.vector_store %arg5[%c0_12, %c0_13, %c0_14], %17 {strides = array<i32>} : memref<1x32x1xf32, #tpu.memory_space<vmem>>, vector<1x32x1xf32>,
    return
  }
  func.func @transform_0(%arg0: i32) -> (i32, i32, i32) {
    %c0_i32 = arith.constant 0 : i32
    %c0_i32_0 = arith.constant 0 : i32
    %c0_i32_1 = arith.constant 0 : i32
    return %arg0, %c0_i32, %c0_i32_0 : i32, i32, i32
  }
  func.func @transform_1(%arg0: i32) -> (i32, i32) {
    %c0_i32 = arith.constant 0 : i32
    %c0_i32_0 = arith.constant 0 : i32
    %c0_i32_1 = arith.constant 0 : i32
    return %c0_i32, %c0_i32_0 : i32, i32
  }
  func.func @transform_2(%arg0: i32) -> (i32, i32, i32) {
    %c0_i32 = arith.constant 0 : i32
    %c0_i32_0 = arith.constant 0 : i32
    %c0_i32_1 = arith.constant 0 : i32
    return %arg0, %c0_i32, %c0_i32_0 : i32, i32, i32
  }
  func.func @transform_3(%arg0: i32) -> (i32, i32, i32) {
    %c0_i32 = arith.constant 0 : i32
    %c0_i32_0 = arith.constant 0 : i32
    %c0_i32_1 = arith.constant 0 : i32
    return %arg0, %c0_i32, %c0_i32_0 : i32, i32, i32
  }
  func.func @transform_4(%arg0: i32) -> (i32, i32, i32) {
    %c0_i32 = arith.constant 0 : i32
    %c0_i32_0 = arith.constant 0 : i32
    %c0_i32_1 = arith.constant 0 : i32
    return %arg0, %c0_i32, %c0_i32_0 : i32, i32, i32
  }
}

module attributes {stable_mosaic.version = 11 : i64} {
  func.func @_stage2_kernel(%arg0: i32, %arg1: memref<1x32x128xf32, #tpu.memory_space<vmem>>, %arg2: memref<32x96xf32, #tpu.memory_space<vmem>>, %arg3: memref<32x1xf32, #tpu.memory_space<vmem>>, %arg4: memref<32x1xf32, #tpu.memory_space<vmem>>, %arg5: memref<1x32x128xf32, #tpu.memory_space<vmem>>, %arg6: memref<1x32x1xf32, #tpu.memory_space<vmem>>, %arg7: memref<1x32x1xf32, #tpu.memory_space<vmem>>) attributes {dimension_semantics = [#tpu.dimension_semantics<parallel>], iteration_bounds = array<i64: 2>, scalar_prefetch = 0 : i64, scratch_operands = 0 : i64, tpu.core_type = #tpu.core_type<tc>, window_params = [{transform_indices = @transform_0, window_bounds = array<i64: 1, 32, 128>}, {pipeline_mode = #tpu.pipeline_mode<synchronous>, transform_indices = @transform_1, window_bounds = array<i64: 32, 96>}, {pipeline_mode = #tpu.pipeline_mode<synchronous>, transform_indices = @transform_2, window_bounds = array<i64: 32, 1>}, {pipeline_mode = #tpu.pipeline_mode<synchronous>, transform_indices = @transform_3, window_bounds = array<i64: 32, 1>}, {transform_indices = @transform_4, window_bounds = array<i64: 1, 32, 128>}, {transform_indices = @transform_5, window_bounds = array<i64: 1, 32, 1>}, {transform_indices = @transform_6, window_bounds = array<i64: 1, 32, 1>}]} {
    %c0 = arith.constant 0 : index
    %c0_0 = arith.constant 0 : index
    %c0_1 = arith.constant 0 : index
    %0 = vector.load %arg1[%c0, %c0_0, %c0_1] : memref<1x32x128xf32, #tpu.memory_space<vmem>>, vector<1x32x128xf32>
    %1 = vector.shape_cast %0 : vector<1x32x128xf32> to vector<32x128xf32>
    %c0_2 = arith.constant 0 : index
    %c0_3 = arith.constant 0 : index
    %2 = vector.load %arg3[%c0_2, %c0_3] : memref<32x1xf32, #tpu.memory_space<vmem>>, vector<32x1xf32>
    %3 = vector.broadcast %2 : vector<32x1xf32> to vector<32x128xf32>
    %4 = arith.mulf %1, %3 : vector<32x128xf32>
    %c0_4 = arith.constant 0 : index
    %c0_5 = arith.constant 0 : index
    %5 = vector.load %arg4[%c0_4, %c0_5] : memref<32x1xf32, #tpu.memory_space<vmem>>, vector<32x1xf32>
    %6 = vector.broadcast %5 : vector<32x1xf32> to vector<32x128xf32>
    %7 = arith.addf %4, %6 : vector<32x128xf32>
    %cst = arith.constant 0.000000e+00 : f32
    %8 = vector.broadcast %cst : f32 to vector<32x128xf32>
    %9 = arith.maximumf %7, %8 : vector<32x128xf32>
    %10 = tpu.iota {dimensions = array<i32: 1>} : vector<32x128xi32>
    %c0_i32 = arith.constant 0 : i32
    %11 = vector.broadcast %c0_i32 : i32 to vector<32x128xi32>
    %12 = arith.cmpi eq, %10, %11 : vector<32x128xi32>
    %c1_i32 = arith.constant 1 : i32
    %13 = tpu.dynamic_rotate %9 by %c1_i32 dim 1 : vector<32x128xf32>, i32 -> vector<32x128xf32>
    %cst_6 = arith.constant 0.000000e+00 : f32
    %14 = vector.broadcast %cst_6 : f32 to vector<32x128xf32>
    %15 = arith.select %12, %14, %13 : vector<32x128xi1>, vector<32x128xf32>
    %c127_i32 = arith.constant 127 : i32
    %16 = vector.broadcast %c127_i32 : i32 to vector<32x128xi32>
    %17 = arith.cmpi eq, %10, %16 : vector<32x128xi32>
    %c127_i32_7 = arith.constant 127 : i32
    %18 = tpu.dynamic_rotate %9 by %c127_i32_7 dim 1 : vector<32x128xf32>, i32 -> vector<32x128xf32>
    %cst_8 = arith.constant 0.000000e+00 : f32
    %19 = vector.broadcast %cst_8 : f32 to vector<32x128xf32>
    %20 = arith.select %17, %19, %18 : vector<32x128xi1>, vector<32x128xf32>
    %21 = tpu.concatenate %15, %9, %20 in 0 : vector<32x128xf32>, vector<32x128xf32>, vector<32x128xf32> -> vector<96x128xf32>
    %c0_9 = arith.constant 0 : index
    %c0_10 = arith.constant 0 : index
    %22 = vector.load %arg2[%c0_9, %c0_10] : memref<32x96xf32, #tpu.memory_space<vmem>>, vector<32x96xf32>
    %cst_11 = arith.constant dense<0.000000e+00> : vector<32x128xf32>
    %23 = tpu.matmul %22, %21, %cst_11 {dimension_numbers = #tpu.dot_dimension_numbers<[1], [0], [0], [1], [0, 0, 1, 1], [], []>} : vector<32x96xf32>, vector<96x128xf32>, vector<32x128xf32> -> vector<32x128xf32>
    %c0_12 = arith.constant 0 : index
    %c0_13 = arith.constant 0 : index
    %c0_14 = arith.constant 0 : index
    %24 = vector.load %arg5[%c0_12, %c0_13, %c0_14] : memref<1x32x128xf32, #tpu.memory_space<vmem>>, vector<1x32x128xf32>
    %25 = vector.shape_cast %24 : vector<1x32x128xf32> to vector<32x128xf32>
    %26 = vector.shape_cast %23 : vector<32x128xf32> to vector<1x32x128xf32>
    tpu.vector_store %arg5[%c0_12, %c0_13, %c0_14], %26 {strides = array<i32>} : memref<1x32x128xf32, #tpu.memory_space<vmem>>, vector<1x32x128xf32>,
    %cst_15 = arith.constant dense<0.000000e+00> : vector<32xf32>
    %27 = vector.multi_reduction <add>, %23, %cst_15 [1] : vector<32x128xf32> to vector<32xf32>
    %28 = vector.shape_cast %27 : vector<32xf32> to vector<32x1xf32>
    %c0_16 = arith.constant 0 : index
    %c0_17 = arith.constant 0 : index
    %c0_18 = arith.constant 0 : index
    %29 = vector.load %arg6[%c0_16, %c0_17, %c0_18] : memref<1x32x1xf32, #tpu.memory_space<vmem>>, vector<1x32x1xf32>
    %30 = vector.shape_cast %29 : vector<1x32x1xf32> to vector<32x1xf32>
    %31 = vector.shape_cast %28 : vector<32x1xf32> to vector<1x32x1xf32>
    tpu.vector_store %arg6[%c0_16, %c0_17, %c0_18], %31 {strides = array<i32>} : memref<1x32x1xf32, #tpu.memory_space<vmem>>, vector<1x32x1xf32>,
    %32 = arith.mulf %23, %23 : vector<32x128xf32>
    %cst_19 = arith.constant dense<0.000000e+00> : vector<32xf32>
    %33 = vector.multi_reduction <add>, %32, %cst_19 [1] : vector<32x128xf32> to vector<32xf32>
    %34 = vector.shape_cast %33 : vector<32xf32> to vector<32x1xf32>
    %c0_20 = arith.constant 0 : index
    %c0_21 = arith.constant 0 : index
    %c0_22 = arith.constant 0 : index
    %35 = vector.load %arg7[%c0_20, %c0_21, %c0_22] : memref<1x32x1xf32, #tpu.memory_space<vmem>>, vector<1x32x1xf32>
    %36 = vector.shape_cast %35 : vector<1x32x1xf32> to vector<32x1xf32>
    %37 = vector.shape_cast %34 : vector<32x1xf32> to vector<1x32x1xf32>
    tpu.vector_store %arg7[%c0_20, %c0_21, %c0_22], %37 {strides = array<i32>} : memref<1x32x1xf32, #tpu.memory_space<vmem>>, vector<1x32x1xf32>,
    return
  }
  func.func @transform_0(%arg0: i32) -> (i32, i32, i32) {
    %c0_i32 = arith.constant 0 : i32
    %c0_i32_0 = arith.constant 0 : i32
    %c0_i32_1 = arith.constant 0 : i32
    return %arg0, %c0_i32, %c0_i32_0 : i32, i32, i32
  }
  func.func @transform_1(%arg0: i32) -> (i32, i32) {
    %c0_i32 = arith.constant 0 : i32
    %c0_i32_0 = arith.constant 0 : i32
    %c0_i32_1 = arith.constant 0 : i32
    return %c0_i32, %c0_i32_0 : i32, i32
  }
  func.func @transform_2(%arg0: i32) -> (i32, i32) {
    %c0_i32 = arith.constant 0 : i32
    %c0_i32_0 = arith.constant 0 : i32
    %c0_i32_1 = arith.constant 0 : i32
    return %c0_i32, %c0_i32_0 : i32, i32
  }
  func.func @transform_3(%arg0: i32) -> (i32, i32) {
    %c0_i32 = arith.constant 0 : i32
    %c0_i32_0 = arith.constant 0 : i32
    %c0_i32_1 = arith.constant 0 : i32
    return %c0_i32, %c0_i32_0 : i32, i32
  }
  func.func @transform_4(%arg0: i32) -> (i32, i32, i32) {
    %c0_i32 = arith.constant 0 : i32
    %c0_i32_0 = arith.constant 0 : i32
    %c0_i32_1 = arith.constant 0 : i32
    return %arg0, %c0_i32, %c0_i32_0 : i32, i32, i32
  }
  func.func @transform_5(%arg0: i32) -> (i32, i32, i32) {
    %c0_i32 = arith.constant 0 : i32
    %c0_i32_0 = arith.constant 0 : i32
    %c0_i32_1 = arith.constant 0 : i32
    return %arg0, %c0_i32, %c0_i32_0 : i32, i32, i32
  }
  func.func @transform_6(%arg0: i32) -> (i32, i32, i32) {
    %c0_i32 = arith.constant 0 : i32
    %c0_i32_0 = arith.constant 0 : i32
    %c0_i32_1 = arith.constant 0 : i32
    return %arg0, %c0_i32, %c0_i32_0 : i32, i32, i32
  }
}

module attributes {stable_mosaic.version = 11 : i64} {
  func.func @_stage3_kernel(%arg0: i32, %arg1: memref<1x32x128xf32, #tpu.memory_space<vmem>>, %arg2: memref<128x32xf32, #tpu.memory_space<vmem>>, %arg3: memref<32x1xf32, #tpu.memory_space<vmem>>, %arg4: memref<32x1xf32, #tpu.memory_space<vmem>>, %arg5: memref<1x32x128xf32, #tpu.memory_space<vmem>>, %arg6: memref<1x128x1xf32, #tpu.memory_space<vmem>>, %arg7: memref<1x128x1xf32, #tpu.memory_space<vmem>>) attributes {dimension_semantics = [#tpu.dimension_semantics<parallel>], iteration_bounds = array<i64: 2>, scalar_prefetch = 0 : i64, scratch_operands = 0 : i64, tpu.core_type = #tpu.core_type<tc>, window_params = [{transform_indices = @transform_0, window_bounds = array<i64: 1, 32, 128>}, {pipeline_mode = #tpu.pipeline_mode<synchronous>, transform_indices = @transform_1, window_bounds = array<i64: 128, 32>}, {pipeline_mode = #tpu.pipeline_mode<synchronous>, transform_indices = @transform_2, window_bounds = array<i64: 32, 1>}, {pipeline_mode = #tpu.pipeline_mode<synchronous>, transform_indices = @transform_3, window_bounds = array<i64: 32, 1>}, {transform_indices = @transform_4, window_bounds = array<i64: 1, 32, 128>}, {transform_indices = @transform_5, window_bounds = array<i64: 1, 128, 1>}, {transform_indices = @transform_6, window_bounds = array<i64: 1, 128, 1>}]} {
    %c0 = arith.constant 0 : index
    %c0_0 = arith.constant 0 : index
    %c0_1 = arith.constant 0 : index
    %0 = vector.load %arg1[%c0, %c0_0, %c0_1] : memref<1x32x128xf32, #tpu.memory_space<vmem>>, vector<1x32x128xf32>
    %1 = vector.shape_cast %0 : vector<1x32x128xf32> to vector<32x128xf32>
    %c0_2 = arith.constant 0 : index
    %c0_3 = arith.constant 0 : index
    %2 = vector.load %arg3[%c0_2, %c0_3] : memref<32x1xf32, #tpu.memory_space<vmem>>, vector<32x1xf32>
    %3 = vector.broadcast %2 : vector<32x1xf32> to vector<32x128xf32>
    %4 = arith.mulf %1, %3 : vector<32x128xf32>
    %c0_4 = arith.constant 0 : index
    %c0_5 = arith.constant 0 : index
    %5 = vector.load %arg4[%c0_4, %c0_5] : memref<32x1xf32, #tpu.memory_space<vmem>>, vector<32x1xf32>
    %6 = vector.broadcast %5 : vector<32x1xf32> to vector<32x128xf32>
    %7 = arith.addf %4, %6 : vector<32x128xf32>
    %cst = arith.constant 0.000000e+00 : f32
    %8 = vector.broadcast %cst : f32 to vector<32x128xf32>
    %9 = arith.maximumf %7, %8 : vector<32x128xf32>
    %c0_6 = arith.constant 0 : index
    %c0_7 = arith.constant 0 : index
    %c0_8 = arith.constant 0 : index
    %10 = vector.load %arg5[%c0_6, %c0_7, %c0_8] : memref<1x32x128xf32, #tpu.memory_space<vmem>>, vector<1x32x128xf32>
    %11 = vector.shape_cast %10 : vector<1x32x128xf32> to vector<32x128xf32>
    %12 = vector.shape_cast %9 : vector<32x128xf32> to vector<1x32x128xf32>
    tpu.vector_store %arg5[%c0_6, %c0_7, %c0_8], %12 {strides = array<i32>} : memref<1x32x128xf32, #tpu.memory_space<vmem>>, vector<1x32x128xf32>,
    %c0_9 = arith.constant 0 : index
    %c0_10 = arith.constant 0 : index
    %13 = vector.load %arg2[%c0_9, %c0_10] : memref<128x32xf32, #tpu.memory_space<vmem>>, vector<128x32xf32>
    %cst_11 = arith.constant dense<0.000000e+00> : vector<128x128xf32>
    %14 = tpu.matmul %13, %9, %cst_11 {dimension_numbers = #tpu.dot_dimension_numbers<[1], [0], [0], [1], [0, 0, 1, 1], [], []>} : vector<128x32xf32>, vector<32x128xf32>, vector<128x128xf32> -> vector<128x128xf32>
    %cst_12 = arith.constant dense<0.000000e+00> : vector<128xf32>
    %15 = vector.multi_reduction <add>, %14, %cst_12 [1] : vector<128x128xf32> to vector<128xf32>
    %16 = vector.shape_cast %15 : vector<128xf32> to vector<128x1xf32>
    %c0_13 = arith.constant 0 : index
    %c0_14 = arith.constant 0 : index
    %c0_15 = arith.constant 0 : index
    %17 = vector.load %arg6[%c0_13, %c0_14, %c0_15] : memref<1x128x1xf32, #tpu.memory_space<vmem>>, vector<1x128x1xf32>
    %18 = vector.shape_cast %17 : vector<1x128x1xf32> to vector<128x1xf32>
    %19 = vector.shape_cast %16 : vector<128x1xf32> to vector<1x128x1xf32>
    tpu.vector_store %arg6[%c0_13, %c0_14, %c0_15], %19 {strides = array<i32>} : memref<1x128x1xf32, #tpu.memory_space<vmem>>, vector<1x128x1xf32>,
    %20 = arith.mulf %14, %14 : vector<128x128xf32>
    %cst_16 = arith.constant dense<0.000000e+00> : vector<128xf32>
    %21 = vector.multi_reduction <add>, %20, %cst_16 [1] : vector<128x128xf32> to vector<128xf32>
    %22 = vector.shape_cast %21 : vector<128xf32> to vector<128x1xf32>
    %c0_17 = arith.constant 0 : index
    %c0_18 = arith.constant 0 : index
    %c0_19 = arith.constant 0 : index
    %23 = vector.load %arg7[%c0_17, %c0_18, %c0_19] : memref<1x128x1xf32, #tpu.memory_space<vmem>>, vector<1x128x1xf32>
    %24 = vector.shape_cast %23 : vector<1x128x1xf32> to vector<128x1xf32>
    %25 = vector.shape_cast %22 : vector<128x1xf32> to vector<1x128x1xf32>
    tpu.vector_store %arg7[%c0_17, %c0_18, %c0_19], %25 {strides = array<i32>} : memref<1x128x1xf32, #tpu.memory_space<vmem>>, vector<1x128x1xf32>,
    return
  }
  func.func @transform_0(%arg0: i32) -> (i32, i32, i32) {
    %c0_i32 = arith.constant 0 : i32
    %c0_i32_0 = arith.constant 0 : i32
    %c0_i32_1 = arith.constant 0 : i32
    return %arg0, %c0_i32, %c0_i32_0 : i32, i32, i32
  }
  func.func @transform_1(%arg0: i32) -> (i32, i32) {
    %c0_i32 = arith.constant 0 : i32
    %c0_i32_0 = arith.constant 0 : i32
    %c0_i32_1 = arith.constant 0 : i32
    return %c0_i32, %c0_i32_0 : i32, i32
  }
  func.func @transform_2(%arg0: i32) -> (i32, i32) {
    %c0_i32 = arith.constant 0 : i32
    %c0_i32_0 = arith.constant 0 : i32
    %c0_i32_1 = arith.constant 0 : i32
    return %c0_i32, %c0_i32_0 : i32, i32
  }
  func.func @transform_3(%arg0: i32) -> (i32, i32) {
    %c0_i32 = arith.constant 0 : i32
    %c0_i32_0 = arith.constant 0 : i32
    %c0_i32_1 = arith.constant 0 : i32
    return %c0_i32, %c0_i32_0 : i32, i32
  }
  func.func @transform_4(%arg0: i32) -> (i32, i32, i32) {
    %c0_i32 = arith.constant 0 : i32
    %c0_i32_0 = arith.constant 0 : i32
    %c0_i32_1 = arith.constant 0 : i32
    return %arg0, %c0_i32, %c0_i32_0 : i32, i32, i32
  }
  func.func @transform_5(%arg0: i32) -> (i32, i32, i32) {
    %c0_i32 = arith.constant 0 : i32
    %c0_i32_0 = arith.constant 0 : i32
    %c0_i32_1 = arith.constant 0 : i32
    return %arg0, %c0_i32, %c0_i32_0 : i32, i32, i32
  }
  func.func @transform_6(%arg0: i32) -> (i32, i32, i32) {
    %c0_i32 = arith.constant 0 : i32
    %c0_i32_0 = arith.constant 0 : i32
    %c0_i32_1 = arith.constant 0 : i32
    return %arg0, %c0_i32, %c0_i32_0 : i32, i32, i32
  }
}

module attributes {stable_mosaic.version = 11 : i64} {
  func.func @_stage4_kernel(%arg0: i32, %arg1: memref<1x32x128xf32, #tpu.memory_space<vmem>>, %arg2: memref<1x128x128xf32, #tpu.memory_space<vmem>>, %arg3: memref<128x32xf32, #tpu.memory_space<vmem>>, %arg4: memref<128x1xf32, #tpu.memory_space<vmem>>, %arg5: memref<128x1xf32, #tpu.memory_space<vmem>>, %arg6: memref<1x128x128xf32, #tpu.memory_space<vmem>>) attributes {dimension_semantics = [#tpu.dimension_semantics<parallel>], iteration_bounds = array<i64: 2>, scalar_prefetch = 0 : i64, scratch_operands = 0 : i64, tpu.core_type = #tpu.core_type<tc>, window_params = [{transform_indices = @transform_0, window_bounds = array<i64: 1, 32, 128>}, {transform_indices = @transform_1, window_bounds = array<i64: 1, 128, 128>}, {pipeline_mode = #tpu.pipeline_mode<synchronous>, transform_indices = @transform_2, window_bounds = array<i64: 128, 32>}, {pipeline_mode = #tpu.pipeline_mode<synchronous>, transform_indices = @transform_3, window_bounds = array<i64: 128, 1>}, {pipeline_mode = #tpu.pipeline_mode<synchronous>, transform_indices = @transform_4, window_bounds = array<i64: 128, 1>}, {transform_indices = @transform_5, window_bounds = array<i64: 1, 128, 128>}]} {
    %c0 = arith.constant 0 : index
    %c0_0 = arith.constant 0 : index
    %0 = vector.load %arg3[%c0, %c0_0] : memref<128x32xf32, #tpu.memory_space<vmem>>, vector<128x32xf32>
    %c0_1 = arith.constant 0 : index
    %c0_2 = arith.constant 0 : index
    %c0_3 = arith.constant 0 : index
    %1 = vector.load %arg1[%c0_1, %c0_2, %c0_3] : memref<1x32x128xf32, #tpu.memory_space<vmem>>, vector<1x32x128xf32>
    %2 = vector.shape_cast %1 : vector<1x32x128xf32> to vector<32x128xf32>
    %cst = arith.constant dense<0.000000e+00> : vector<128x128xf32>
    %3 = tpu.matmul %0, %2, %cst {dimension_numbers = #tpu.dot_dimension_numbers<[1], [0], [0], [1], [0, 0, 1, 1], [], []>} : vector<128x32xf32>, vector<32x128xf32>, vector<128x128xf32> -> vector<128x128xf32>
    %c0_4 = arith.constant 0 : index
    %c0_5 = arith.constant 0 : index
    %4 = vector.load %arg4[%c0_4, %c0_5] : memref<128x1xf32, #tpu.memory_space<vmem>>, vector<128x1xf32>
    %5 = vector.broadcast %4 : vector<128x1xf32> to vector<128x128xf32>
    %6 = arith.mulf %3, %5 : vector<128x128xf32>
    %c0_6 = arith.constant 0 : index
    %c0_7 = arith.constant 0 : index
    %7 = vector.load %arg5[%c0_6, %c0_7] : memref<128x1xf32, #tpu.memory_space<vmem>>, vector<128x1xf32>
    %8 = vector.broadcast %7 : vector<128x1xf32> to vector<128x128xf32>
    %9 = arith.addf %6, %8 : vector<128x128xf32>
    %c0_8 = arith.constant 0 : index
    %c0_9 = arith.constant 0 : index
    %c0_10 = arith.constant 0 : index
    %10 = vector.load %arg2[%c0_8, %c0_9, %c0_10] : memref<1x128x128xf32, #tpu.memory_space<vmem>>, vector<1x128x128xf32>
    %11 = vector.shape_cast %10 : vector<1x128x128xf32> to vector<128x128xf32>
    %12 = arith.addf %9, %11 : vector<128x128xf32>
    %cst_11 = arith.constant 0.000000e+00 : f32
    %13 = vector.broadcast %cst_11 : f32 to vector<128x128xf32>
    %14 = arith.maximumf %12, %13 : vector<128x128xf32>
    %c0_12 = arith.constant 0 : index
    %c0_13 = arith.constant 0 : index
    %c0_14 = arith.constant 0 : index
    %15 = vector.load %arg6[%c0_12, %c0_13, %c0_14] : memref<1x128x128xf32, #tpu.memory_space<vmem>>, vector<1x128x128xf32>
    %16 = vector.shape_cast %15 : vector<1x128x128xf32> to vector<128x128xf32>
    %17 = vector.shape_cast %14 : vector<128x128xf32> to vector<1x128x128xf32>
    tpu.vector_store %arg6[%c0_12, %c0_13, %c0_14], %17 {strides = array<i32>} : memref<1x128x128xf32, #tpu.memory_space<vmem>>, vector<1x128x128xf32>,
    return
  }
  func.func @transform_0(%arg0: i32) -> (i32, i32, i32) {
    %c0_i32 = arith.constant 0 : i32
    %c0_i32_0 = arith.constant 0 : i32
    %c0_i32_1 = arith.constant 0 : i32
    return %arg0, %c0_i32, %c0_i32_0 : i32, i32, i32
  }
  func.func @transform_1(%arg0: i32) -> (i32, i32, i32) {
    %c0_i32 = arith.constant 0 : i32
    %c0_i32_0 = arith.constant 0 : i32
    %c0_i32_1 = arith.constant 0 : i32
    return %arg0, %c0_i32, %c0_i32_0 : i32, i32, i32
  }
  func.func @transform_2(%arg0: i32) -> (i32, i32) {
    %c0_i32 = arith.constant 0 : i32
    %c0_i32_0 = arith.constant 0 : i32
    %c0_i32_1 = arith.constant 0 : i32
    return %c0_i32, %c0_i32_0 : i32, i32
  }
  func.func @transform_3(%arg0: i32) -> (i32, i32) {
    %c0_i32 = arith.constant 0 : i32
    %c0_i32_0 = arith.constant 0 : i32
    %c0_i32_1 = arith.constant 0 : i32
    return %c0_i32, %c0_i32_0 : i32, i32
  }
  func.func @transform_4(%arg0: i32) -> (i32, i32) {
    %c0_i32 = arith.constant 0 : i32
    %c0_i32_0 = arith.constant 0 : i32
    %c0_i32_1 = arith.constant 0 : i32
    return %c0_i32, %c0_i32_0 : i32, i32
  }
  func.func @transform_5(%arg0: i32) -> (i32, i32, i32) {
    %c0_i32 = arith.constant 0 : i32
    %c0_i32_0 = arith.constant 0 : i32
    %c0_i32_1 = arith.constant 0 : i32
    return %arg0, %c0_i32, %c0_i32_0 : i32, i32, i32
  }
}

</mosaic_0001>

<bundles_post_ra>
// kernel: bottleneck1d_pallas.4
= control target key start
LH: loop header
LB: loop body
LE: loop exit
PB: predicated region body
PF: predicated region fallthrough
CT: control target
= control target key end

     0   :  { %s648_s15 = smov 0   ;;  %s718_s0 = inlined_call_operand.vmem [shape: f32[2,128,128], index: 0, kind: input, shape index: {}]   ;;  %s719_s1 = inlined_call_operand.vmem [shape: f32[32,128], index: 1, kind: input, shape index: {}]   ;;  %s720_s2 = inlined_call_operand.vmem [shape: f32[2,32,128], index: 2, kind: output, shape index: {0}]   ;;  %s721_s3 = inlined_call_operand.vmem [shape: f32[2,32,1], index: 3, kind: output, shape index: {1}]   ;;  %s722_s4 = inlined_call_operand.vmem [shape: f32[2,32,1], index: 4, kind: output, shape index: {2}]  }
   0x1 LB: > { %s482_s16 = sadd.s32 4294967295, %s621_s15   ;;  %p486_p0 = scmp.ge.s32.totalorder %s621_s15, 1  ;;  %s621_s15 = sphi %s648_s15, %s15_s15  }
   0x2   : > { %p167_p1 = scmp.lt.s32.totalorder %s621_s15, 3 }
   0x4   : > { %p168_p2 = pnand %p486_p0, %p167_p1 }
   0x5   : > { %p203_p3 = scmp.lt.s32.totalorder (!%p168_p2), %s482_s16, 1  ;;  %v223_v0 = vld [vmem:[%s719_s1] sm:$0xff] (!%p168_p2)  ;;  %v225_v1 = vld [vmem:[%s719_s1 + $0x10] sm:$0xff] (!%p168_p2)  ;;  %v224_v26 = vld [vmem:[%s719_s1 + $0x8] sm:$0xff] (!%p168_p2)  ;;  %vm340_vm0 = vcmask (!%p168_p2), 7168  }
   0x6   : > { %171 = sbr.rel (%p168_p2) target bundleno = 418 (0x1a2), region = 28  ;;  %553 = vmatprep.mubr.f32.mxu0 (!%p168_p2), %v223_v0  ;;  %556 = vmatprep.mubr.f32.mxu1 (!%p168_p2), %v225_v1  ;;  %v226_v27 = vld [vmem:[%s719_s1 + $0x18] sm:$0xff] (!%p168_p2) }
   0xd   : > { %s724_s16 = smov (!%p203_p3, %s482_s16), 1 }
   0xe   : > { %s497_s21 = sshll.u32 %s724_s16, 7  ;;  %s693_s29 = sshll.u32 %s724_s16, 5 }
   0xf   : > { %s668_s24 = scalar_lea.vmem %s718_s0, %s497_s21  ;;  %s212_s6 = scalar_lea.vmem %s720_s2, %s693_s29 }
  0x10   : > { %v227_v2 = vld [vmem:[%s668_s24] sm:$0xff]  ;;  %v228_v3 = vld [vmem:[%s668_s24 + $0x8] sm:$0xff]  ;;  %v229_v4 = vld [vmem:[%s668_s24 + $0x10] sm:$0xff]  ;;  %s217_s9 = scalar_lea.vmem %s721_s3, %s693_s29  ;;  %s222_s12 = scalar_lea.vmem %s722_s4, %s693_s29 }
  0x11   : > { %v559_v5 = vpack.c.bf16 %v228_v3, %v227_v2  ;;  %v230_v6 = vld [vmem:[%s668_s24 + $0x18] sm:$0xff]  ;;  %v231_v8 = vld [vmem:[%s668_s24 + $0x20] sm:$0xff]  ;;  %v232_v9 = vld [vmem:[%s668_s24 + $0x28] sm:$0xff] }
  0x12   : > { %v563_v7 = vpack.c.bf16 %v230_v6, %v229_v4  ;;  %v567_v10 = vpack.c.bf16 %v232_v9, %v231_v8  ;;  %v233_v11 = vld [vmem:[%s668_s24 + $0x30] sm:$0xff]  ;;  %v234_v12 = vld [vmem:[%s668_s24 + $0x38] sm:$0xff]  ;;  %v235_v14 = vld [vmem:[%s668_s24 + $0x40] sm:$0xff] }
  0x13   : > { %560 = vmatprep.subr.bf16.mxu0 %v559_v5  ;;  %591 = vmatprep.subr.bf16.mxu1 %v559_v5  ;;  %v571_v13 = vpack.c.bf16 %v234_v12, %v233_v11  ;;  %v236_v15 = vld [vmem:[%s668_s24 + $0x48] sm:$0xff]  ;;  %v237_v17 = vld [vmem:[%s668_s24 + $0x50] sm:$0xff]  ;;  %v238_v18 = vld [vmem:[%s668_s24 + $0x58] sm:$0xff] }
  0x14   : > { %562 = vmatpush3.bf16.msra.mxu0 %v559_v5  ;;  %599 = vmatpush3.bf16.msra.mxu1 %v559_v5  ;;  %v575_v16 = vpack.c.bf16 %v236_v15, %v235_v14  ;;  %v579_v19 = vpack.c.bf16 %v238_v18, %v237_v17  ;;  %v239_v20 = vld [vmem:[%s668_s24 + $0x60] sm:$0xff]  ;;  %v240_v21 = vld [vmem:[%s668_s24 + $0x68] sm:$0xff]  ;;  %v241_v23 = vld [vmem:[%s668_s24 + $0x70] sm:$0xff] }
  0x15   : > { %564 = vmatprep.subr.bf16.mxu0 %v563_v7  ;;  %592 = vmatprep.subr.bf16.mxu1 %v563_v7  ;;  %v583_v22 = vpack.c.bf16 %v240_v21, %v239_v20  ;;  %v242_v24 = vld [vmem:[%s668_s24 + $0x78] sm:$0xff] }
  0x16   : > { %v587_v25 = vpack.c.bf16 %v242_v24, %v241_v23 }
  0x18   : > { %566 = vmatpush3.bf16.msra.mxu0 %v563_v7  ;;  %600 = vmatpush3.bf16.msra.mxu1 %v563_v7 }
  0x19   : > { %568 = vmatprep.subr.bf16.mxu0 %v567_v10  ;;  %593 = vmatprep.subr.bf16.mxu1 %v567_v10 }
  0x1c   : > { %570 = vmatpush3.bf16.msra.mxu0 %v567_v10  ;;  %601 = vmatpush3.bf16.msra.mxu1 %v567_v10 }
  0x1d   : > { %572 = vmatprep.subr.bf16.mxu0 %v571_v13  ;;  %594 = vmatprep.subr.bf16.mxu1 %v571_v13 }
  0x20   : > { %574 = vmatpush3.bf16.msra.mxu0 %v571_v13  ;;  %602 = vmatpush3.bf16.msra.mxu1 %v571_v13 }
  0x21   : > { %576 = vmatprep.subr.bf16.mxu0 %v575_v16  ;;  %595 = vmatprep.subr.bf16.mxu1 %v575_v16 }
  0x24   : > { %578 = vmatpush3.bf16.msra.mxu0 %v575_v16  ;;  %603 = vmatpush3.bf16.msra.mxu1 %v575_v16 }
  0x25   : > { %580 = vmatprep.subr.bf16.mxu0 %v579_v19  ;;  %596 = vmatprep.subr.bf16.mxu1 %v579_v19 }
  0x28   : > { %582 = vmatpush3.bf16.msra.mxu0 %v579_v19  ;;  %604 = vmatpush3.bf16.msra.mxu1 %v579_v19 }
  0x29   : > { %584 = vmatprep.subr.bf16.mxu0 %v583_v22  ;;  %597 = vmatprep.subr.bf16.mxu1 %v583_v22 }
  0x2c   : > { %586 = vmatpush3.bf16.msra.mxu0 %v583_v22  ;;  %605 = vmatpush3.bf16.msra.mxu1 %v583_v22 }
  0x2d   : > { %588 = vmatprep.subr.bf16.mxu0 %v587_v25  ;;  %598 = vmatprep.subr.bf16.mxu1 %v587_v25 }
  0x30   : > { %590 = vmatpush3.bf16.msra.mxu0 %v587_v25  ;;  %606 = vmatpush3.bf16.msra.mxu1 %v587_v25 }
  0x33   : > { %554 = vmatmul.mubr.f32.vlgmr.msra.gmra.mrb[0].mxu0 %v224_v26  ;;  %557 = vmatmul.mubr.f32.vlgmr.msra.gmra.mrb[0].mxu1 %v226_v27 }
 0x106   : > { %v555_v28 = vpop.f32.mrb[0].mxu0  ;;  %v558_v29 = vpop.f32.mrb[0].mxu1 }
 0x107   : > { %329 = vst [vmem:[%s212_s6 + $0x8] sm:$0xff] %v555_v28  ;;  %331 = vst [vmem:[%s212_s6 + $0x18] sm:$0xff] %v558_v29  ;;  %338 = vadd.xlane.f32.xlu1 %v558_v29  ;;  %v319_v30 = vpop.f32.mrb[1].mxu1  ;;  %334 = vadd.xlane.f32.xlu0 %v555_v28  ;;  %v309_v31 = vpop.f32.mrb[1].mxu0  ;;  %v346_v32 = vmul.f32 %v555_v28, %v555_v28  ;;  %v348_v34 = vmul.f32 %v558_v29, %v558_v29 }
 0x108   : > { %330 = vst [vmem:[%s212_s6 + $0x10] sm:$0xff] %v319_v30  ;;  %328 = vst [vmem:[%s212_s6] sm:$0xff] %v309_v31  ;;  %v345_v33 = vmul.f32 %v309_v31, %v309_v31  ;;  %v347_v35 = vmul.f32 %v319_v30, %v319_v30 }
 0x10b   : > { %336 = vadd.xlane.f32.xlu1 %v319_v30  ;;  %332 = vadd.xlane.f32.xlu0 %v309_v31 }
 0x10f   : > { %351 = vadd.xlane.f32.xlu1 %v346_v32  ;;  %349 = vadd.xlane.f32.xlu0 %v345_v33 }
 0x113   : > { %355 = vadd.xlane.f32.xlu1 %v348_v34  ;;  %353 = vadd.xlane.f32.xlu0 %v347_v35 }
 0x194   : > { %v339_v36 = vpop.xlane.xlu1 %338  ;;  %v335_v37 = vpop.xlane.xlu0 %334 }
 0x195   : > { %344 = vst.msk [vmem:[%s217_s9 + $0x18] sm:$0xff] %vm340_vm0, %v339_v36  ;;  %342 = vst.msk [vmem:[%s217_s9 + $0x8] sm:$0xff] %vm340_vm0, %v335_v37 }
 0x198   : > { %v337_v38 = vpop.xlane.xlu1 %336  ;;  %v333_v39 = vpop.xlane.xlu0 %332 }
 0x199   : > { %343 = vst.msk [vmem:[%s217_s9 + $0x10] sm:$0xff] %vm340_vm0, %v337_v38  ;;  %341 = vst.msk [vmem:[%s217_s9] sm:$0xff] %vm340_vm0, %v333_v39 }
 0x19c   : > { %v352_v40 = vpop.xlane.xlu1 %351  ;;  %v350_v41 = vpop.xlane.xlu0 %349 }
 0x19d   : > { %358 = vst.msk [vmem:[%s222_s12 + $0x8] sm:$0xff] %vm340_vm0, %v352_v40  ;;  %357 = vst.msk [vmem:[%s222_s12] sm:$0xff] %vm340_vm0, %v350_v41 }
 0x1a0   : > { %v356_v42 = vpop.xlane.xlu1 %355  ;;  %v354_v43 = vpop.xlane.xlu0 %353 }
 0x1a1   : > { %360 = vst.msk [vmem:[%s222_s12 + $0x18] sm:$0xff] %vm340_vm0, %v356_v42  ;;  %359 = vst.msk [vmem:[%s222_s12 + $0x10] sm:$0xff] %vm340_vm0, %v354_v43 }
 0x1a2 PF: > { %s15_s15 = sadd.s32 1, %s621_s15  }
 0x1a3   : > { %p12_p4 = scmp.ge.s32.totalorder %s15_s15, 4  }
 0x1a5   :  { %14 = sbr.rel (!%p12_p4) target bundleno = 1 (0x1), region = 82 }

// kernel: bottleneck1d_pallas.5
= control target key start
LH: loop header
LB: loop body
LE: loop exit
PB: predicated region body
PF: predicated region fallthrough
CT: control target
= control target key end

     0   :  { %s835_s21 = smov 0   ;;  %s912_s0 = inlined_call_operand.vmem [shape: f32[2,32,128], index: 0, kind: input, shape index: {}]   ;;  %s913_s1 = inlined_call_operand.vmem [shape: f32[32,96], index: 1, kind: input, shape index: {}]   ;;  %s914_s2 = inlined_call_operand.vmem [shape: f32[32,1], index: 2, kind: input, shape index: {}]   ;;  %s915_s3 = inlined_call_operand.vmem [shape: f32[32,1], index: 3, kind: input, shape index: {}]   ;;  %s916_s4 = inlined_call_operand.vmem [shape: f32[2,32,128], index: 4, kind: output, shape index: {0}]   ;;  %s917_s5 = inlined_call_operand.vmem [shape: f32[2,32,1], index: 5, kind: output, shape index: {1}]   ;;  %s918_s6 = inlined_call_operand.vmem [shape: f32[2,32,1], index: 6, kind: output, shape index: {2}]  }
   0x1 LB: > { %s625_s22 = sadd.s32 4294967295, %s795_s21   ;;  %p629_p0 = scmp.ge.s32.totalorder %s795_s21, 1  ;;  %s795_s21 = sphi %s835_s21, %s17_s21  }
   0x2   : > { %p217_p1 = scmp.lt.s32.totalorder %s795_s21, 3 }
   0x4   : > { %p218_p2 = pnand %p629_p0, %p217_p1 }
   0x5   : > { %v309_v0 = vld [vmem:[%s915_s3] sm:$0xff] (!%p218_p2)  ;;  %v797_v2 = vmov (!%p218_p2), 0   ;;  %v310_v3 = vld [vmem:[%s915_s3 + $0x8] sm:$0xff] (!%p218_p2)  ;;  %v284_v5 = vld [vmem:[%s914_s2 + $0x18] sm:$0xff] (!%p218_p2)  ;;  %p257_p3 = scmp.lt.s32.totalorder (!%p218_p2), %s625_s22, 1  ;;  %s798_s19 = smov (!%p218_p2), 1   ;;  %v341_v39 = vlaneseq (!%p218_p2) }
   0x6   : > { %221 = sbr.rel (%p218_p2) target bundleno = 663 (0x297), region = 36  ;;  %v281_v1 = vld [vmem:[%s914_s2] sm:$0xff] (!%p218_p2)  ;;  %768 = vset.pattern.permute.xlu1 (!%p218_p2), %v797_v2  ;;  %767 = vset.pattern.permute.xlu0 (!%p218_p2), %v797_v2  ;;  %v282_v4 = vld [vmem:[%s914_s2 + $0x8] sm:$0xff] (!%p218_p2)  ;;  %v283_v6 = vld [vmem:[%s914_s2 + $0x10] sm:$0xff] (!%p218_p2)  ;;  %s799_s20 = smov (!%p218_p2), 127   ;;  %vm373_vm0 = vcmask (!%p218_p2), 785408  }
   0x7   : > { %315 = vperm.xlu1 (!%p218_p2), %768, %v309_v0   ;;  %287 = vperm.xlu0 (!%p218_p2), %767, %v281_v1   ;;  %v312_v7 = vld [vmem:[%s915_s3 + $0x18] sm:$0xff] (!%p218_p2)  ;;  %v311_v8 = vld [vmem:[%s915_s3 + $0x10] sm:$0xff] (!%p218_p2)  ;;  %v369_v37 = vld [vmem:[%s913_s1] sm:$0xff] (!%p218_p2)  ;;  %v342_v40 = vand.u32 (!%p218_p2), 127, %v341_v39  ;;  %vm483_vm5 = vcmask (!%p218_p2), 7168  }
   0x8   : > { %v371_v38 = vld [vmem:[%s913_s1 + $0x10] sm:$0xff] (!%p218_p2)  ;;  %706 = vmatprep.mubr.msk.f32.mxu0 (!%p218_p2), %vm373_vm0, %v369_v37  ;;  %v370_v57 = vld [vmem:[%s913_s1 + $0x8] sm:$0xff] (!%p218_p2)  ;;  %v372_v58 = vld [vmem:[%s913_s1 + $0x18] sm:$0xff] (!%p218_p2) }
   0x9   : > { %709 = vmatprep.mubr.msk.f32.mxu1 (!%p218_p2), %vm373_vm0, %v371_v38  ;;  %vm664_vm1 = vcmp.ne.s32.totalorder (!%p218_p2), %v342_v40, 0  ;;  %vm665_vm3 = vcmp.ne.s32.totalorder (!%p218_p2), %v342_v40, 127 }
   0xa   : > { %vm713_vm2 = vmpackc.low (!%p218_p2), %vm664_vm1, %vm664_vm1 }
   0xb   : > { %320 = vperm.xlu1 (!%p218_p2), %768, %v310_v3   ;;  %292 = vperm.xlu0 (!%p218_p2), %767, %v282_v4   ;;  %vm733_vm4 = vmpackc.low (!%p218_p2), %vm665_vm3, %vm665_vm3 }
   0xd   : > { %s920_s22 = smov (!%p257_p3, %s625_s22), 1 }
   0xe   : > { %s867_s15 = sshll.u32 %s920_s22, 5 }
   0xf   : > { %302 = vperm.xlu1 %768, %v284_v5   ;;  %297 = vperm.xlu0 %767, %v283_v6   ;;  %s261_s18 = scalar_lea.vmem %s912_s0, %s867_s15  ;;  %s266_s8 = scalar_lea.vmem %s916_s4, %s867_s15 }
  0x10   : > { %v277_v9 = vld [vmem:[%s261_s18] sm:$0xff]  ;;  %v278_v13 = vld [vmem:[%s261_s18 + $0x8] sm:$0xff]  ;;  %v280_v20 = vld [vmem:[%s261_s18 + $0x18] sm:$0xff]  ;;  %s271_s11 = scalar_lea.vmem %s917_s5, %s867_s15  ;;  %s276_s14 = scalar_lea.vmem %s918_s6, %s867_s15 }
  0x11   : > { %v279_v22 = vld [vmem:[%s261_s18 + $0x10] sm:$0xff] }
  0x13   : > { %330 = vperm.xlu1 %768, %v312_v7   ;;  %325 = vperm.xlu0 %767, %v311_v8  }
  0x86   : > { %v316_v10 = vpop.permute.xlu1 %315  ;;  %v288_v11 = vpop.permute.xlu0 %287 }
  0x87   : > { %v305_v12 = vmul.f32 %v288_v11, %v277_v9 }
  0x89   : > { %v333_v16 = vadd.f32 %v316_v10, %v305_v12 }
  0x8a   : > { %v321_v14 = vpop.permute.xlu1 %320  ;;  %v293_v15 = vpop.permute.xlu0 %292 }
  0x8b   : > { %v306_v17 = vmul.f32 %v293_v15, %v278_v13  ;;  %v337_v23 = vmax.f32 %v333_v16, 0.0 }
  0x8d   : > { %v334_v18 = vadd.f32 %v321_v14, %v306_v17 }
  0x8e   : > { %v303_v19 = vpop.permute.xlu1 %302  ;;  %v298_v21 = vpop.permute.xlu0 %297 }
  0x8f   : > { %v338_v24 = vmax.f32 %v334_v18, 0.0  ;;  %v308_v25 = vmul.f32 %v303_v19, %v280_v20  ;;  %v307_v26 = vmul.f32 %v298_v21, %v279_v22 }
  0x91   : > { %v769_v27 = vpack.i.bf16 %v338_v24, %v337_v23  ;;  %v724_v28 = vpack.c.bf16 %v338_v24, %v337_v23 }
  0x92   : > { %v331_v29 = vpop.permute.xlu1 %330  ;;  %v326_v30 = vpop.permute.xlu0 %325 }
  0x93   : > { %v336_v31 = vadd.f32 %v331_v29, %v308_v25  ;;  %v335_v32 = vadd.f32 %v326_v30, %v307_v26  ;;  %770 = vrot.lane.b32.xlu0 %v769_v27, %s798_s19 }
  0x95   : > { %v340_v33 = vmax.f32 %v336_v31, 0.0  ;;  %v339_v34 = vmax.f32 %v335_v32, 0.0 }
  0x97   : > { %v728_v35 = vpack.c.bf16 %v340_v33, %v339_v34  ;;  %780 = vrot.lane.b32.xlu0 %v769_v27, %s799_s20  ;;  %v774_v36 = vpack.i.bf16 %v340_v33, %v339_v34 }
  0x99   : > { %775 = vrot.lane.b32.xlu1 %v774_v36, %s798_s19 }
  0x9d   : > { %785 = vrot.lane.b32.xlu1 %v774_v36, %s799_s20 }
 0x105   : > { %v771_v41 = vpop.permute.xlu0 %770 }
 0x106   : > { %v773_v42 = vunpack.i.h.bf16 %v771_v41  ;;  %v772_v43 = vunpack.i.l.bf16 %v771_v41 }
 0x108   : > { %v712_v44 = vpack.c.bf16 %v773_v42, %v772_v43 }
 0x109   : > { %v781_v49 = vpop.permute.xlu0 %780 }
 0x10a   : > { %714 = vmatprep.subr.msk.bf16.mxu0 %vm713_vm2, %v712_v44  ;;  %744 = vmatprep.subr.msk.bf16.mxu1 %vm713_vm2, %v712_v44  ;;  %v783_v50 = vunpack.i.h.bf16 %v781_v49  ;;  %v782_v51 = vunpack.i.l.bf16 %v781_v49 }
 0x10b   : > { %v776_v45 = vpop.permute.xlu1 %775  ;;  %717 = vmatpush3.bf16.msk.msra.mxu0 %vm713_vm2, %v712_v44  ;;  %750 = vmatpush3.bf16.msk.msra.mxu1 %vm713_vm2, %v712_v44 }
 0x10c   : > { %v778_v46 = vunpack.i.h.bf16 %v776_v45  ;;  %v777_v47 = vunpack.i.l.bf16 %v776_v45  ;;  %v732_v53 = vpack.c.bf16 %v783_v50, %v782_v51 }
 0x10e   : > { %v718_v48 = vpack.c.bf16 %v778_v46, %v777_v47 }
 0x10f   : > { %v786_v52 = vpop.permute.xlu1 %785 }
 0x110   : > { %720 = vmatprep.subr.msk.bf16.mxu0 %vm713_vm2, %v718_v48  ;;  %745 = vmatprep.subr.msk.bf16.mxu1 %vm713_vm2, %v718_v48  ;;  %v788_v54 = vunpack.i.h.bf16 %v786_v52  ;;  %v787_v55 = vunpack.i.l.bf16 %v786_v52 }
 0x111   : > { %723 = vmatpush3.bf16.msk.msra.mxu0 %vm713_vm2, %v718_v48  ;;  %751 = vmatpush3.bf16.msk.msra.mxu1 %vm713_vm2, %v718_v48 }
 0x112   : > { %725 = vmatprep.subr.bf16.mxu0 %v724_v28  ;;  %746 = vmatprep.subr.bf16.mxu1 %v724_v28  ;;  %v738_v56 = vpack.c.bf16 %v788_v54, %v787_v55 }
 0x115   : > { %727 = vmatpush3.bf16.msra.mxu0 %v724_v28  ;;  %752 = vmatpush3.bf16.msra.mxu1 %v724_v28 }
 0x116   : > { %729 = vmatprep.subr.bf16.mxu0 %v728_v35  ;;  %747 = vmatprep.subr.bf16.mxu1 %v728_v35 }
 0x119   : > { %731 = vmatpush3.bf16.msra.mxu0 %v728_v35  ;;  %753 = vmatpush3.bf16.msra.mxu1 %v728_v35 }
 0x11a   : > { %734 = vmatprep.subr.msk.bf16.mxu0 %vm733_vm4, %v732_v53  ;;  %748 = vmatprep.subr.msk.bf16.mxu1 %vm733_vm4, %v732_v53 }
 0x11d   : > { %737 = vmatpush3.bf16.msk.msra.mxu0 %vm733_vm4, %v732_v53  ;;  %754 = vmatpush3.bf16.msk.msra.mxu1 %vm733_vm4, %v732_v53 }
 0x11e   : > { %740 = vmatprep.subr.msk.bf16.mxu0 %vm733_vm4, %v738_v56  ;;  %749 = vmatprep.subr.msk.bf16.mxu1 %vm733_vm4, %v738_v56 }
 0x121   : > { %743 = vmatpush3.bf16.msk.msra.mxu0 %vm733_vm4, %v738_v56  ;;  %755 = vmatpush3.bf16.msk.msra.mxu1 %vm733_vm4, %v738_v56 }
 0x124   : > { %707 = vmatmul.mubr.msk.f32.vlgmr.msra.gmra.mrb[0].mxu0 %vm373_vm0, %v370_v57  ;;  %710 = vmatmul.mubr.msk.f32.vlgmr.msra.gmra.mrb[0].mxu1 %vm373_vm0, %v372_v58 }
 0x1f7   : > { %v708_v59 = vpop.f32.mrb[0].mxu0  ;;  %v711_v60 = vpop.f32.mrb[0].mxu1 }
 0x1f8   : > { %472 = vst [vmem:[%s266_s8 + $0x8] sm:$0xff] %v708_v59  ;;  %474 = vst [vmem:[%s266_s8 + $0x18] sm:$0xff] %v711_v60  ;;  %481 = vadd.xlane.f32.xlu0 %v711_v60  ;;  %v462_v61 = vpop.f32.mrb[1].mxu1  ;;  %477 = vadd.xlane.f32.xlu1 %v708_v59  ;;  %v452_v62 = vpop.f32.mrb[1].mxu0  ;;  %v489_v1 = vmul.f32 %v708_v59, %v708_v59  ;;  %v491_v2 = vmul.f32 %v711_v60, %v711_v60 }
 0x1f9   : > { %473 = vst [vmem:[%s266_s8 + $0x10] sm:$0xff] %v462_v61  ;;  %471 = vst [vmem:[%s266_s8] sm:$0xff] %v452_v62  ;;  %v488_v63 = vmul.f32 %v452_v62, %v452_v62  ;;  %v490_v0 = vmul.f32 %v462_v61, %v462_v61 }
 0x1fc   : > { %475 = vadd.xlane.f32.xlu0 %v452_v62  ;;  %492 = vadd.xlane.f32.xlu1 %v488_v63 }
 0x200   : > { %479 = vadd.xlane.f32.xlu0 %v462_v61  ;;  %496 = vadd.xlane.f32.xlu1 %v490_v0 }
 0x204   : > { %494 = vadd.xlane.f32.xlu0 %v489_v1 }
 0x208   : > { %498 = vadd.xlane.f32.xlu0 %v491_v2 }
 0x285   : > { %v482_v3 = vpop.xlane.xlu0 %481  ;;  %v478_v4 = vpop.xlane.xlu1 %477 }
 0x286   : > { %487 = vst.msk [vmem:[%s271_s11 + $0x18] sm:$0xff] %vm483_vm5, %v482_v3  ;;  %485 = vst.msk [vmem:[%s271_s11 + $0x8] sm:$0xff] %vm483_vm5, %v478_v4 }
 0x289   : > { %v476_v5 = vpop.xlane.xlu0 %475  ;;  %v493_v6 = vpop.xlane.xlu1 %492 }
 0x28a   : > { %484 = vst.msk [vmem:[%s271_s11] sm:$0xff] %vm483_vm5, %v476_v5  ;;  %500 = vst.msk [vmem:[%s276_s14] sm:$0xff] %vm483_vm5, %v493_v6 }
 0x28d   : > { %v480_v7 = vpop.xlane.xlu0 %479  ;;  %v497_v8 = vpop.xlane.xlu1 %496 }
 0x28e   : > { %486 = vst.msk [vmem:[%s271_s11 + $0x10] sm:$0xff] %vm483_vm5, %v480_v7  ;;  %502 = vst.msk [vmem:[%s276_s14 + $0x10] sm:$0xff] %vm483_vm5, %v497_v8 }
 0x291   : > { %v495_v9 = vpop.xlane.xlu0 %494 }
 0x292   : > { %501 = vst.msk [vmem:[%s276_s14 + $0x8] sm:$0xff] %vm483_vm5, %v495_v9 }
 0x295   : > { %v499_v10 = vpop.xlane.xlu0 %498 }
 0x296   : > { %503 = vst.msk [vmem:[%s276_s14 + $0x18] sm:$0xff] %vm483_vm5, %v499_v10 }
 0x297 PF: > { %s17_s21 = sadd.s32 1, %s795_s21  }
 0x298   : > { %p14_p4 = scmp.ge.s32.totalorder %s17_s21, 4  }
 0x29a   :  { %16 = sbr.rel (!%p14_p4) target bundleno = 1 (0x1), region = 90 }

// kernel: bottleneck1d_pallas.6
= control target key start
LH: loop header
LB: loop body
LE: loop exit
PB: predicated region body
PF: predicated region fallthrough
CT: control target
= control target key end

     0   :  { %s943_s21 = smov 0   ;;  %s1130_s0 = inlined_call_operand.vmem [shape: f32[2,32,128], index: 0, kind: input, shape index: {}]   ;;  %s1131_s1 = inlined_call_operand.vmem [shape: f32[128,32], index: 1, kind: input, shape index: {}]   ;;  %s1132_s2 = inlined_call_operand.vmem [shape: f32[32,1], index: 2, kind: input, shape index: {}]   ;;  %s1133_s3 = inlined_call_operand.vmem [shape: f32[32,1], index: 3, kind: input, shape index: {}]   ;;  %s1134_s4 = inlined_call_operand.vmem [shape: f32[2,32,128], index: 4, kind: output, shape index: {0}]   ;;  %s1135_s5 = inlined_call_operand.vmem [shape: f32[2,128,1], index: 5, kind: output, shape index: {1}]   ;;  %s1136_s6 = inlined_call_operand.vmem [shape: f32[2,128,1], index: 6, kind: output, shape index: {2}]  }
   0x1 LB: > { %s789_s22 = sadd.s32 4294967295, %s905_s21   ;;  %p793_p0 = scmp.ge.s32.totalorder %s905_s21, 1  ;;  %s905_s21 = sphi %s943_s21, %s17_s21  }
   0x2   : > { %p217_p1 = scmp.lt.s32.totalorder %s905_s21, 3 }
   0x4   : > { %p218_p2 = pnand %p793_p0, %p217_p1 }
   0x5   : > { %v309_v0 = vld [vmem:[%s1133_s3] sm:$0xff] (!%p218_p2)  ;;  %v907_v2 = vmov (!%p218_p2), 0   ;;  %v310_v3 = vld [vmem:[%s1133_s3 + $0x8] sm:$0xff] (!%p218_p2)  ;;  %v284_v5 = vld [vmem:[%s1132_s2 + $0x18] sm:$0xff] (!%p218_p2)  ;;  %vm361_vm0 = vcmask (!%p218_p2), 261120   ;;  %p257_p3 = scmp.lt.s32.totalorder (!%p218_p2), %s789_s22, 1 }
   0x6   : > { %221 = sbr.rel (%p218_p2) target bundleno = 576 (0x240), region = 36  ;;  %v281_v1 = vld [vmem:[%s1132_s2] sm:$0xff] (!%p218_p2)  ;;  %898 = vset.pattern.permute.xlu1 (!%p218_p2), %v907_v2  ;;  %897 = vset.pattern.permute.xlu0 (!%p218_p2), %v907_v2  ;;  %v282_v4 = vld [vmem:[%s1132_s2 + $0x8] sm:$0xff] (!%p218_p2)  ;;  %v283_v6 = vld [vmem:[%s1132_s2 + $0x10] sm:$0xff] (!%p218_p2)  ;;  %vm587_vm1 = vcmask (!%p218_p2), 7168  }
   0x7   : > { %315 = vperm.xlu1 (!%p218_p2), %898, %v309_v0   ;;  %287 = vperm.xlu0 (!%p218_p2), %897, %v281_v1   ;;  %v312_v7 = vld [vmem:[%s1133_s3 + $0x18] sm:$0xff] (!%p218_p2)  ;;  %v311_v8 = vld [vmem:[%s1133_s3 + $0x10] sm:$0xff] (!%p218_p2)  ;;  %v345_v9 = vld [vmem:[%s1131_s1] sm:$0xff] (!%p218_p2) }
   0x8   : > { %v353_v10 = vld [vmem:[%s1131_s1 + $0x40] sm:$0xff] (!%p218_p2)  ;;  %852 = vmatprep.mubr.msk.f32.mxu0 (!%p218_p2), %vm361_vm0, %v345_v9  ;;  %v346_v37 = vld [vmem:[%s1131_s1 + $0x8] sm:$0xff] (!%p218_p2)  ;;  %v347_v39 = vld [vmem:[%s1131_s1 + $0x10] sm:$0xff] (!%p218_p2) }
   0x9   : > { %864 = vmatprep.mubr.msk.f32.mxu1 (!%p218_p2), %vm361_vm0, %v353_v10  ;;  %v354_v38 = vld [vmem:[%s1131_s1 + $0x48] sm:$0xff] (!%p218_p2)  ;;  %v355_v40 = vld [vmem:[%s1131_s1 + $0x50] sm:$0xff] (!%p218_p2)  ;;  %v348_v41 = vld [vmem:[%s1131_s1 + $0x18] sm:$0xff] (!%p218_p2) }
   0xa   : > { %v356_v42 = vld [vmem:[%s1131_s1 + $0x58] sm:$0xff] (!%p218_p2)  ;;  %v349_v43 = vld [vmem:[%s1131_s1 + $0x20] sm:$0xff] (!%p218_p2)  ;;  %v350_v45 = vld [vmem:[%s1131_s1 + $0x28] sm:$0xff] (!%p218_p2) }
   0xb   : > { %320 = vperm.xlu1 (!%p218_p2), %898, %v310_v3   ;;  %292 = vperm.xlu0 (!%p218_p2), %897, %v282_v4   ;;  %v357_v44 = vld [vmem:[%s1131_s1 + $0x60] sm:$0xff] (!%p218_p2)  ;;  %v358_v46 = vld [vmem:[%s1131_s1 + $0x68] sm:$0xff] (!%p218_p2)  ;;  %v351_v47 = vld [vmem:[%s1131_s1 + $0x30] sm:$0xff] (!%p218_p2) }
   0xc   : > { %v359_v48 = vld [vmem:[%s1131_s1 + $0x70] sm:$0xff] (!%p218_p2)  ;;  %v352_v49 = vld [vmem:[%s1131_s1 + $0x38] sm:$0xff] (!%p218_p2) }
   0xd   : > { %s1138_s22 = smov (!%p257_p3, %s789_s22), 1  ;;  %v360_v50 = vld [vmem:[%s1131_s1 + $0x78] sm:$0xff] }
   0xe   : > { %s820_s19 = sshll.u32 %s1138_s22, 5  ;;  %s822_s10 = sshll.u32 %s1138_s22, 7 }
   0xf   : > { %302 = vperm.xlu1 %898, %v284_v5   ;;  %297 = vperm.xlu0 %897, %v283_v6   ;;  %s261_s24 = scalar_lea.vmem %s1130_s0, %s820_s19  ;;  %s266_s27 = scalar_lea.vmem %s1134_s4, %s820_s19 }
  0x10   : > { %v277_v11 = vld [vmem:[%s261_s24] sm:$0xff]  ;;  %v278_v15 = vld [vmem:[%s261_s24 + $0x8] sm:$0xff]  ;;  %v280_v23 = vld [vmem:[%s261_s24 + $0x18] sm:$0xff]  ;;  %s1056_s13 = scalar_lea.vmem %s1135_s5, %s822_s10  ;;  %s1069_s15 = scalar_lea.vmem %s1136_s6, %s822_s10 }
  0x11   : > { %v279_v25 = vld [vmem:[%s261_s24 + $0x10] sm:$0xff] }
  0x13   : > { %330 = vperm.xlu1 %898, %v312_v7   ;;  %325 = vperm.xlu0 %897, %v311_v8  }
  0x86   : > { %v316_v12 = vpop.permute.xlu1 %315  ;;  %v288_v13 = vpop.permute.xlu0 %287 }
  0x87   : > { %v305_v14 = vmul.f32 %v288_v13, %v277_v11 }
  0x89   : > { %v333_v16 = vadd.f32 %v316_v12, %v305_v14 }
  0x8a   : > { %v321_v17 = vpop.permute.xlu1 %320  ;;  %v293_v18 = vpop.permute.xlu0 %292 }
  0x8b   : > { %v337_v19 = vmax.f32 %v333_v16, 0.0  ;;  %v306_v20 = vmul.f32 %v293_v18, %v278_v15 }
  0x8d   : > { %341 = vst [vmem:[%s266_s27] sm:$0xff] %v337_v19  ;;  %v334_v21 = vadd.f32 %v321_v17, %v306_v20 }
  0x8e   : > { %v303_v22 = vpop.permute.xlu1 %302  ;;  %v298_v24 = vpop.permute.xlu0 %297 }
  0x8f   : > { %v338_v26 = vmax.f32 %v334_v21, 0.0  ;;  %v308_v28 = vmul.f32 %v303_v22, %v280_v23  ;;  %v307_v29 = vmul.f32 %v298_v24, %v279_v25 }
  0x91   : > { %342 = vst [vmem:[%s266_s27 + $0x8] sm:$0xff] %v338_v26  ;;  %v876_v27 = vpack.c.bf16 %v338_v26, %v337_v19 }
  0x92   : > { %v331_v30 = vpop.permute.xlu1 %330  ;;  %v326_v31 = vpop.permute.xlu0 %325 }
  0x93   : > { %v336_v32 = vadd.f32 %v331_v30, %v308_v28  ;;  %v335_v33 = vadd.f32 %v326_v31, %v307_v29  ;;  %877 = vmatprep.subr.bf16.mxu0 %v876_v27  ;;  %884 = vmatprep.subr.bf16.mxu1 %v876_v27 }
  0x94   : > { %879 = vmatpush3.bf16.msra.mxu0 %v876_v27  ;;  %886 = vmatpush3.bf16.msra.mxu1 %v876_v27 }
  0x95   : > { %v340_v34 = vmax.f32 %v336_v32, 0.0  ;;  %v339_v35 = vmax.f32 %v335_v33, 0.0 }
  0x97   : > { %344 = vst [vmem:[%s266_s27 + $0x18] sm:$0xff] %v340_v34  ;;  %343 = vst [vmem:[%s266_s27 + $0x10] sm:$0xff] %v339_v35  ;;  %v880_v36 = vpack.c.bf16 %v340_v34, %v339_v35 }
  0x99   : > { %881 = vmatprep.subr.bf16.mxu0 %v880_v36  ;;  %885 = vmatprep.subr.bf16.mxu1 %v880_v36 }
  0x9a   : > { %883 = vmatpush3.bf16.msra.mxu0 %v880_v36  ;;  %887 = vmatpush3.bf16.msra.mxu1 %v880_v36 }
  0x9d   : > { %853 = vmatmul.mubr.msk.f32.vlgmr.msra.gmra.mrb[0].mxu0 %vm361_vm0, %v346_v37  ;;  %865 = vmatmul.mubr.msk.f32.vlgmr.msra.gmra.mrb[0].mxu1 %vm361_vm0, %v354_v38 }
  0x9e   : > { %855 = vmatprep.mubr.msk.f32.mxu0 %vm361_vm0, %v347_v39  ;;  %867 = vmatprep.mubr.msk.f32.mxu1 %vm361_vm0, %v355_v40 }
  0xa1   : > { %856 = vmatmul.mubr.msk.f32.gmra.mrb[2].mxu0 %vm361_vm0, %v348_v41  ;;  %868 = vmatmul.mubr.msk.f32.gmra.mrb[2].mxu1 %vm361_vm0, %v356_v42 }
  0xa2   : > { %858 = vmatprep.mubr.msk.f32.mxu0 %vm361_vm0, %v349_v43  ;;  %870 = vmatprep.mubr.msk.f32.mxu1 %vm361_vm0, %v357_v44 }
  0xa5   : > { %859 = vmatmul.mubr.msk.f32.gmra.mrb[4].mxu0 %vm361_vm0, %v350_v45  ;;  %871 = vmatmul.mubr.msk.f32.gmra.mrb[4].mxu1 %vm361_vm0, %v358_v46 }
  0xa6   : > { %861 = vmatprep.mubr.msk.f32.mxu0 %vm361_vm0, %v351_v47  ;;  %873 = vmatprep.mubr.msk.f32.mxu1 %vm361_vm0, %v359_v48 }
  0xa9   : > { %862 = vmatmul.mubr.msk.f32.gmra.mrb[6].mxu0 %vm361_vm0, %v352_v49  ;;  %874 = vmatmul.mubr.msk.f32.gmra.mrb[6].mxu1 %vm361_vm0, %v360_v50 }
 0x170   : > { %v854_v51 = vpop.f32.mrb[0].mxu0  ;;  %v866_v52 = vpop.f32.mrb[0].mxu1 }
 0x171   : > { %573 = vadd.xlane.f32.xlu0 %v866_v52  ;;  %v516_v53 = vpop.f32.mrb[1].mxu1  ;;  %557 = vadd.xlane.f32.xlu1 %v854_v51  ;;  %v476_v54 = vpop.f32.mrb[1].mxu0  ;;  %v605_v59 = vmul.f32 %v854_v51, %v854_v51  ;;  %v613_v1 = vmul.f32 %v866_v52, %v866_v52 }
 0x172   : > { %v604_v60 = vmul.f32 %v476_v54, %v476_v54  ;;  %v612_v2 = vmul.f32 %v516_v53, %v516_v53 }
 0x174   : > { %v857_v55 = vpop.f32.mrb[2].mxu0  ;;  %v869_v56 = vpop.f32.mrb[2].mxu1 }
 0x175   : > { %571 = vadd.xlane.f32.xlu1 %v516_v53  ;;  %555 = vadd.xlane.f32.xlu0 %v476_v54  ;;  %v486_v57 = vpop.f32.mrb[3].mxu0  ;;  %v526_v58 = vpop.f32.mrb[3].mxu1  ;;  %v607_v9 = vmul.f32 %v857_v55, %v857_v55  ;;  %v615_v10 = vmul.f32 %v869_v56, %v869_v56 }
 0x176   : > { %v606_v7 = vmul.f32 %v486_v57, %v486_v57  ;;  %v614_v8 = vmul.f32 %v526_v58, %v526_v58 }
 0x178   : > { %v860_v61 = vpop.f32.mrb[4].mxu0  ;;  %v872_v62 = vpop.f32.mrb[4].mxu1 }
 0x179   : > { %622 = vadd.xlane.f32.xlu0 %v605_v59  ;;  %620 = vadd.xlane.f32.xlu1 %v604_v60  ;;  %v496_v63 = vpop.f32.mrb[5].mxu0  ;;  %v536_v0 = vpop.f32.mrb[5].mxu1  ;;  %v609_v13 = vmul.f32 %v860_v61, %v860_v61  ;;  %v617_v14 = vmul.f32 %v872_v62, %v872_v62 }
 0x17a   : > { %v608_v11 = vmul.f32 %v496_v63, %v496_v63  ;;  %v616_v12 = vmul.f32 %v536_v0, %v536_v0 }
 0x17c   : > { %v863_v3 = vpop.f32.mrb[6].mxu0  ;;  %v875_v4 = vpop.f32.mrb[6].mxu1 }
 0x17d   : > { %638 = vadd.xlane.f32.xlu0 %v613_v1  ;;  %636 = vadd.xlane.f32.xlu1 %v612_v2  ;;  %v506_v5 = vpop.f32.mrb[7].mxu0  ;;  %v546_v6 = vpop.f32.mrb[7].mxu1  ;;  %v611_v17 = vmul.f32 %v863_v3, %v863_v3  ;;  %v619_v18 = vmul.f32 %v875_v4, %v875_v4 }
 0x17e   : > { %v610_v15 = vmul.f32 %v506_v5, %v506_v5  ;;  %v618_v16 = vmul.f32 %v546_v6, %v546_v6 }
 0x181   : > { %575 = vadd.xlane.f32.xlu1 %v526_v58  ;;  %561 = vadd.xlane.f32.xlu0 %v857_v55 }
 0x185   : > { %577 = vadd.xlane.f32.xlu0 %v869_v56  ;;  %624 = vadd.xlane.f32.xlu1 %v606_v7 }
 0x189   : > { %559 = vadd.xlane.f32.xlu0 %v486_v57  ;;  %640 = vadd.xlane.f32.xlu1 %v614_v8 }
 0x18d   : > { %626 = vadd.xlane.f32.xlu0 %v607_v9  ;;  %563 = vadd.xlane.f32.xlu1 %v496_v63 }
 0x191   : > { %642 = vadd.xlane.f32.xlu0 %v615_v10  ;;  %579 = vadd.xlane.f32.xlu1 %v536_v0 }
 0x195   : > { %565 = vadd.xlane.f32.xlu0 %v860_v61  ;;  %628 = vadd.xlane.f32.xlu1 %v608_v11 }
 0x199   : > { %581 = vadd.xlane.f32.xlu0 %v872_v62  ;;  %644 = vadd.xlane.f32.xlu1 %v616_v12 }
 0x19d   : > { %630 = vadd.xlane.f32.xlu0 %v609_v13  ;;  %567 = vadd.xlane.f32.xlu1 %v506_v5 }
 0x1a1   : > { %646 = vadd.xlane.f32.xlu0 %v617_v14  ;;  %583 = vadd.xlane.f32.xlu1 %v546_v6 }
 0x1a5   : > { %569 = vadd.xlane.f32.xlu0 %v863_v3  ;;  %632 = vadd.xlane.f32.xlu1 %v610_v15 }
 0x1a9   : > { %585 = vadd.xlane.f32.xlu0 %v875_v4  ;;  %648 = vadd.xlane.f32.xlu1 %v618_v16 }
 0x1ad   : > { %634 = vadd.xlane.f32.xlu0 %v611_v17 }
 0x1b1   : > { %650 = vadd.xlane.f32.xlu0 %v619_v18 }
 0x1fe   : > { %v574_v19 = vpop.xlane.xlu0 %573  ;;  %v558_v20 = vpop.xlane.xlu1 %557 }
 0x1ff   : > { %597 = vst.msk [vmem:[%s1056_s13 + $0x48] sm:$0xff] %vm587_vm1, %v574_v19  ;;  %589 = vst.msk [vmem:[%s1056_s13 + $0x8] sm:$0xff] %vm587_vm1, %v558_v20 }
 0x202   : > { %v572_v21 = vpop.xlane.xlu1 %571  ;;  %v556_v22 = vpop.xlane.xlu0 %555 }
 0x203   : > { %596 = vst.msk [vmem:[%s1056_s13 + $0x40] sm:$0xff] %vm587_vm1, %v572_v21  ;;  %588 = vst.msk [vmem:[%s1056_s13] sm:$0xff] %vm587_vm1, %v556_v22 }
 0x206   : > { %v623_v23 = vpop.xlane.xlu0 %622  ;;  %v621_v24 = vpop.xlane.xlu1 %620 }
 0x207   : > { %653 = vst.msk [vmem:[%s1069_s15 + $0x8] sm:$0xff] %vm587_vm1, %v623_v23  ;;  %652 = vst.msk [vmem:[%s1069_s15] sm:$0xff] %vm587_vm1, %v621_v24 }
 0x20a   : > { %v639_v25 = vpop.xlane.xlu0 %638  ;;  %v637_v26 = vpop.xlane.xlu1 %636 }
 0x20b   : > { %661 = vst.msk [vmem:[%s1069_s15 + $0x48] sm:$0xff] %vm587_vm1, %v639_v25  ;;  %660 = vst.msk [vmem:[%s1069_s15 + $0x40] sm:$0xff] %vm587_vm1, %v637_v26 }
 0x20e   : > { %v576_v27 = vpop.xlane.xlu1 %575  ;;  %v562_v28 = vpop.xlane.xlu0 %561 }
 0x20f   : > { %598 = vst.msk [vmem:[%s1056_s13 + $0x50] sm:$0xff] %vm587_vm1, %v576_v27  ;;  %591 = vst.msk [vmem:[%s1056_s13 + $0x18] sm:$0xff] %vm587_vm1, %v562_v28 }
 0x212   : > { %v578_v29 = vpop.xlane.xlu0 %577  ;;  %v625_v30 = vpop.xlane.xlu1 %624 }
 0x213   : > { %599 = vst.msk [vmem:[%s1056_s13 + $0x58] sm:$0xff] %vm587_vm1, %v578_v29  ;;  %654 = vst.msk [vmem:[%s1069_s15 + $0x10] sm:$0xff] %vm587_vm1, %v625_v30 }
 0x216   : > { %v560_v31 = vpop.xlane.xlu0 %559  ;;  %v641_v32 = vpop.xlane.xlu1 %640 }
 0x217   : > { %590 = vst.msk [vmem:[%s1056_s13 + $0x10] sm:$0xff] %vm587_vm1, %v560_v31  ;;  %662 = vst.msk [vmem:[%s1069_s15 + $0x50] sm:$0xff] %vm587_vm1, %v641_v32 }
 0x21a   : > { %v627_v33 = vpop.xlane.xlu0 %626  ;;  %v564_v34 = vpop.xlane.xlu1 %563 }
 0x21b   : > { %655 = vst.msk [vmem:[%s1069_s15 + $0x18] sm:$0xff] %vm587_vm1, %v627_v33  ;;  %592 = vst.msk [vmem:[%s1056_s13 + $0x20] sm:$0xff] %vm587_vm1, %v564_v34 }
 0x21e   : > { %v643_v35 = vpop.xlane.xlu0 %642  ;;  %v580_v36 = vpop.xlane.xlu1 %579 }
 0x21f   : > { %663 = vst.msk [vmem:[%s1069_s15 + $0x58] sm:$0xff] %vm587_vm1, %v643_v35  ;;  %600 = vst.msk [vmem:[%s1056_s13 + $0x60] sm:$0xff] %vm587_vm1, %v580_v36 }
 0x222   : > { %v566_v37 = vpop.xlane.xlu0 %565  ;;  %v629_v38 = vpop.xlane.xlu1 %628 }
 0x223   : > { %593 = vst.msk [vmem:[%s1056_s13 + $0x28] sm:$0xff] %vm587_vm1, %v566_v37  ;;  %656 = vst.msk [vmem:[%s1069_s15 + $0x20] sm:$0xff] %vm587_vm1, %v629_v38 }
 0x226   : > { %v582_v39 = vpop.xlane.xlu0 %581  ;;  %v645_v40 = vpop.xlane.xlu1 %644 }
 0x227   : > { %601 = vst.msk [vmem:[%s1056_s13 + $0x68] sm:$0xff] %vm587_vm1, %v582_v39  ;;  %664 = vst.msk [vmem:[%s1069_s15 + $0x60] sm:$0xff] %vm587_vm1, %v645_v40 }
 0x22a   : > { %v631_v41 = vpop.xlane.xlu0 %630  ;;  %v568_v42 = vpop.xlane.xlu1 %567 }
 0x22b   : > { %657 = vst.msk [vmem:[%s1069_s15 + $0x28] sm:$0xff] %vm587_vm1, %v631_v41  ;;  %594 = vst.msk [vmem:[%s1056_s13 + $0x30] sm:$0xff] %vm587_vm1, %v568_v42 }
 0x22e   : > { %v647_v43 = vpop.xlane.xlu0 %646  ;;  %v584_v44 = vpop.xlane.xlu1 %583 }
 0x22f   : > { %665 = vst.msk [vmem:[%s1069_s15 + $0x68] sm:$0xff] %vm587_vm1, %v647_v43  ;;  %602 = vst.msk [vmem:[%s1056_s13 + $0x70] sm:$0xff] %vm587_vm1, %v584_v44 }
 0x232   : > { %v570_v45 = vpop.xlane.xlu0 %569  ;;  %v633_v46 = vpop.xlane.xlu1 %632 }
 0x233   : > { %595 = vst.msk [vmem:[%s1056_s13 + $0x38] sm:$0xff] %vm587_vm1, %v570_v45  ;;  %658 = vst.msk [vmem:[%s1069_s15 + $0x30] sm:$0xff] %vm587_vm1, %v633_v46 }
 0x236   : > { %v586_v47 = vpop.xlane.xlu0 %585  ;;  %v649_v48 = vpop.xlane.xlu1 %648 }
 0x237   : > { %603 = vst.msk [vmem:[%s1056_s13 + $0x78] sm:$0xff] %vm587_vm1, %v586_v47  ;;  %666 = vst.msk [vmem:[%s1069_s15 + $0x70] sm:$0xff] %vm587_vm1, %v649_v48 }
 0x23a   : > { %v635_v49 = vpop.xlane.xlu0 %634 }
 0x23b   : > { %659 = vst.msk [vmem:[%s1069_s15 + $0x38] sm:$0xff] %vm587_vm1, %v635_v49 }
 0x23e   : > { %v651_v50 = vpop.xlane.xlu0 %650 }
 0x23f   : > { %667 = vst.msk [vmem:[%s1069_s15 + $0x78] sm:$0xff] %vm587_vm1, %v651_v50 }
 0x240 PF: > { %s17_s21 = sadd.s32 1, %s905_s21  }
 0x241   : > { %p14_p4 = scmp.ge.s32.totalorder %s17_s21, 4  }
 0x243   :  { %16 = sbr.rel (!%p14_p4) target bundleno = 1 (0x1), region = 90 }

// kernel: bottleneck1d_pallas.7
= control target key start
LH: loop header
LB: loop body
LE: loop exit
PB: predicated region body
PF: predicated region fallthrough
CT: control target
= control target key end

     0   :  { %10 = vsyncpa [#allocation3], 0  ;;  %s1422_s0 = inlined_call_operand.vmem [shape: f32[2,32,128], index: 0, kind: input, shape index: {}]   ;;  %s1423_s1 = inlined_call_operand.vmem [shape: f32[2,128,128], index: 1, kind: input, shape index: {}]   ;;  %s1424_s2 = inlined_call_operand.vmem [shape: f32[128,32], index: 2, kind: input, shape index: {}]   ;;  %s1425_s3 = inlined_call_operand.vmem [shape: f32[128,1], index: 3, kind: input, shape index: {}]   ;;  %s1426_s4 = inlined_call_operand.vmem [shape: f32[128,1], index: 4, kind: input, shape index: {}]   ;;  %s1427_s5 = inlined_call_operand.hbm [shape: f32[2,128,128], index: 5, kind: output, shape index: {}]  }
   0x1   :  { %12 = vsyncpa [#allocation3 + $0x1], 0  ;;  %s1072_s18 = smov 0   ;;  %s1074_s19 = smov 0  }
   0x2   :  { %s1076_s20 = smov 0   ;;  %s1078_s21 = smov 0  }
   0x3 LB: > { %s1093_s22 = sadd.s32 4294967295, %s1036_s21   ;;  %s833_s23 = sadd.s32 4294967294, %s1036_s21   ;;  %s1036_s21 = sphi %s1078_s21, %s1433_s21   ;;  %s1032_s20 = sphi %s1076_s20, %s1432_s20   ;;  %s1028_s19 = sphi %s1074_s19, %s1431_s19   ;;  %s1024_s18 = sphi %s1072_s18, %s1430_s18  }
   0x4   : > { %s1097_s24 = sadd.s32 1, %s1036_s21   ;;  %s140_s25 = sadd.s32 1, %s1032_s20 }
   0x5   : > { %s137_s26 = ssub.s32 %s1036_s21, %s1097_s24  ;;  %p150_p0 = scmp.ne.s32.totalorder %s1032_s20, %s1028_s19 }
   0x6   : > { %p138_p1 = scmp.eq.s32.totalorder %s137_s26, 0  ;;  %p151_p2 = scmp.eq.s32.totalorder %s1093_s22, 1 }
   0x7   : > { %p156_p3 = scmp.ne.s32.totalorder %s1028_s19, %s1024_s18  ;;  %p157_p4 = scmp.eq.s32.totalorder %s833_s23, 1 }
   0x8   : > { %s1108_s27 = scalar_select %p138_p1, %s1032_s20, %s140_s25  }
   0x9   : > { %p1110_p5 = por %p151_p2, %p150_p0  ;;  %p1114_p6 = por %p157_p4, %p156_p3 }
   0xa   : > { %p836_p7 = scmp.ge.s32.totalorder %s1036_s21, 1  ;;  %p200_p8 = scmp.lt.s32.totalorder %s1036_s21, 3 }
   0xc   : > { %p201_p9 = pnand %p836_p7, %p200_p8 }
   0xd   : > { %v459_v0 = vld [vmem:[%s1425_s3 + $0x10] sm:$0xff] (!%p201_p9)  ;;  %v457_v1 = vld [vmem:[%s1425_s3] sm:$0xff] (!%p201_p9)  ;;  %p233_p10 = scmp.lt.s32.totalorder (!%p201_p9), %s1093_s22, 1  ;;  %vm263_vm0 = vcmask (!%p201_p9), 261120   ;;  %v1038_v2 = vmov (!%p201_p9), 0   ;;  %v460_v4 = vld [vmem:[%s1425_s3 + $0x18] sm:$0xff] (!%p201_p9) }
   0xe   : > { %204 = sbr.rel (%p201_p9) target bundleno = 285 (0x11d), region = 40  ;;  %973 = vset.pattern.permute.xlu1 (!%p201_p9), %v1038_v2  ;;  %972 = vset.pattern.permute.xlu0 (!%p201_p9), %v1038_v2  ;;  %v243_v3 = vld [vmem:[%s1424_s2] sm:$0xff] (!%p201_p9)  ;;  %v458_v5 = vld [vmem:[%s1425_s3 + $0x8] sm:$0xff] (!%p201_p9)  ;;  %v464_v15 = vld [vmem:[%s1425_s3 + $0x38] sm:$0xff] (!%p201_p9)  ;;  %s230_s26 = sand.u32 (!%p201_p9), 1, %s1028_s19  }
   0xf   : > { %485 = vperm.xlu1 (!%p201_p9), %973, %v459_v0   ;;  %475 = vperm.xlu0 (!%p201_p9), %972, %v457_v1   ;;  %v251_v6 = vld [vmem:[%s1424_s2 + $0x40] sm:$0xff] (!%p201_p9)  ;;  %v462_v11 = vld [vmem:[%s1425_s3 + $0x28] sm:$0xff] (!%p201_p9)  ;;  %v463_v16 = vld [vmem:[%s1425_s3 + $0x30] sm:$0xff] (!%p201_p9)  ;;  %s865_s6 = sshll.u32 (!%p201_p9), %s1093_s22, 11  ;;  %s1381_s11 = scalar_lea.sflag (!%p201_p9), [#allocation3], %s230_s26 }
  0x10   : > { %894 = vmatprep.mubr.msk.f32.mxu0 (!%p201_p9), %vm263_vm0, %v243_v3  ;;  %906 = vmatprep.mubr.msk.f32.mxu1 (!%p201_p9), %vm263_vm0, %v251_v6  ;;  %v461_v12 = vld [vmem:[%s1425_s3 + $0x20] sm:$0xff] (!%p201_p9)  ;;  %v244_v17 = vld [vmem:[%s1424_s2 + $0x8] sm:$0xff] (!%p201_p9)  ;;  %v245_v21 = vld [vmem:[%s1424_s2 + $0x10] sm:$0xff] (!%p201_p9)  ;;  %s1039_s13 = smov (!%p201_p9), [#allocation2]  }
  0x11   : > { %v252_v18 = vld [vmem:[%s1424_s2 + $0x48] sm:$0xff] (!%p201_p9)  ;;  %v465_v20 = vld [vmem:[%s1425_s3 + $0x40] sm:$0xff] (!%p201_p9)  ;;  %v253_v22 = vld [vmem:[%s1424_s2 + $0x50] sm:$0xff] (!%p201_p9)  ;;  %s978_s14 = sshll.u32 (!%p201_p9), %s1039_s13, 4  ;;  %s979_s14 = int_to_ptr.vmem [resolvable:$false] %s978_s14 }
  0x12   : > { %v466_v19 = vld [vmem:[%s1425_s3 + $0x48] sm:$0xff] (!%p201_p9)  ;;  %v246_v23 = vld [vmem:[%s1424_s2 + $0x18] sm:$0xff] (!%p201_p9)  ;;  %v467_v26 = vld [vmem:[%s1425_s3 + $0x50] sm:$0xff] (!%p201_p9)  ;;  %s980_s15 = scalar_lea.vmem (!%p201_p9), %s979_s14, 4096 }
  0x13   : > { %490 = vperm.xlu1 (!%p201_p9), %973, %v460_v4   ;;  %480 = vperm.xlu0 (!%p201_p9), %972, %v458_v5   ;;  %v254_v24 = vld [vmem:[%s1424_s2 + $0x58] sm:$0xff] (!%p201_p9)  ;;  %v247_v27 = vld [vmem:[%s1424_s2 + $0x20] sm:$0xff] (!%p201_p9)  ;;  %v248_v29 = vld [vmem:[%s1424_s2 + $0x28] sm:$0xff] (!%p201_p9) }
  0x14   : > { %v468_v25 = vld [vmem:[%s1425_s3 + $0x58] sm:$0xff] (!%p201_p9)  ;;  %v255_v28 = vld [vmem:[%s1424_s2 + $0x60] sm:$0xff] (!%p201_p9)  ;;  %v256_v30 = vld [vmem:[%s1424_s2 + $0x68] sm:$0xff] (!%p201_p9) }
  0x15   : > { %s1128_s9 = scalar_select %p233_p10, %s1093_s22, 1  ;;  %v470_v31 = vld [vmem:[%s1425_s3 + $0x68] sm:$0xff]  ;;  %v469_v32 = vld [vmem:[%s1425_s3 + $0x60] sm:$0xff]  ;;  %v249_v33 = vld [vmem:[%s1424_s2 + $0x30] sm:$0xff] }
  0x16   : > { %v257_v34 = vld [vmem:[%s1424_s2 + $0x70] sm:$0xff]  ;;  %v250_v35 = vld [vmem:[%s1424_s2 + $0x38] sm:$0xff]  ;;  %v570_v39 = vld [vmem:[%s1426_s4 + $0x8] sm:$0xff]  ;;  %s1371_s22 = scalar_lea.hbm %s1427_s5, %s865_s6 }
  0x17   : > { %s863_s23 = sshll.u32 %s1128_s9, 5  ;;  %500 = vperm.xlu1 %973, %v462_v11   ;;  %495 = vperm.xlu0 %972, %v461_v12   ;;  %v258_v36 = vld [vmem:[%s1424_s2 + $0x78] sm:$0xff]  ;;  %v471_v38 = vld [vmem:[%s1425_s3 + $0x70] sm:$0xff]  ;;  %v569_v40 = vld [vmem:[%s1426_s4] sm:$0xff]  ;;  %s864_s16 = sshll.u32 %s1128_s9, 7 }
  0x18   : > { %s237_s30 = scalar_lea.vmem %s1422_s0, %s863_s23  ;;  %v472_v37 = vld [vmem:[%s1425_s3 + $0x78] sm:$0xff]  ;;  %v571_v42 = vld [vmem:[%s1426_s4 + $0x10] sm:$0xff]  ;;  %v574_v43 = vld [vmem:[%s1426_s4 + $0x28] sm:$0xff]  ;;  %s1316_s25 = scalar_lea.vmem %s1423_s1, %s864_s16 }
  0x19   : > { %v259_v7 = vld [vmem:[%s237_s30] sm:$0xff]  ;;  %v260_v8 = vld [vmem:[%s237_s30 + $0x8] sm:$0xff]  ;;  %v261_v9 = vld [vmem:[%s237_s30 + $0x10] sm:$0xff]  ;;  %s1323_s9 = sshll.u32 %s230_s26, 7 }
  0x1a   : > { %v918_v10 = vpack.c.bf16 %v260_v8, %v259_v7  ;;  %v262_v13 = vld [vmem:[%s237_s30 + $0x18] sm:$0xff]  ;;  %v573_v44 = vld [vmem:[%s1426_s4 + $0x20] sm:$0xff]  ;;  %v575_v46 = vld [vmem:[%s1426_s4 + $0x30] sm:$0xff]  ;;  %s1332_s30 = scalar_lea.vmem [#allocation2], %s1323_s9 }
  0x1b   : > { %v922_v14 = vpack.c.bf16 %v262_v13, %v261_v9  ;;  %510 = vperm.xlu1 %973, %v464_v15   ;;  %505 = vperm.xlu0 %972, %v463_v16   ;;  %v572_v41 = vld [vmem:[%s1426_s4 + $0x18] sm:$0xff]  ;;  %v578_v47 = vld [vmem:[%s1426_s4 + $0x48] sm:$0xff]  ;;  %v577_v48 = vld [vmem:[%s1426_s4 + $0x40] sm:$0xff]  ;;  %s759_s7 = sshll.u32 %s1332_s30, 4  ;;  %s1373_s7 = int_to_ptr.vmem [resolvable:$true] %s759_s7 }
  0x1c   : > { %919 = vmatprep.subr.bf16.mxu0 %v918_v10  ;;  %926 = vmatprep.subr.bf16.mxu1 %v918_v10  ;;  %v576_v45 = vld [vmem:[%s1426_s4 + $0x38] sm:$0xff]  ;;  %v579_v50 = vld [vmem:[%s1426_s4 + $0x50] sm:$0xff]  ;;  %v582_v51 = vld [vmem:[%s1426_s4 + $0x68] sm:$0xff]  ;;  %s974_s12 = scalar_lea.vmem %s1373_s7, 2048  ;;  %p981_p0 = scmp.lt.s32.totalorder %s1373_s7, %s979_s14 }
  0x1d   : > { %921 = vmatpush3.bf16.msra.mxu0 %v918_v10  ;;  %928 = vmatpush3.bf16.msra.mxu1 %v918_v10  ;;  %v580_v49 = vld [vmem:[%s1426_s4 + $0x58] sm:$0xff]  ;;  %v581_v52 = vld [vmem:[%s1426_s4 + $0x60] sm:$0xff]  ;;  %v583_v54 = vld [vmem:[%s1426_s4 + $0x70] sm:$0xff]  ;;  %p975_p11 = scmp.ne.s32.totalorder %s1373_s7, %s974_s12  ;;  %p982_p1 = scmp.lt.s32.totalorder %s980_s15, %s974_s12 }
  0x1e   : > { %923 = vmatprep.subr.bf16.mxu0 %v922_v14  ;;  %927 = vmatprep.subr.bf16.mxu1 %v922_v14  ;;  %v584_v53 = vld [vmem:[%s1426_s4 + $0x78] sm:$0xff] }
  0x1f   : > { %520 = vperm.xlu1 %973, %v466_v19   ;;  %515 = vperm.xlu0 %972, %v465_v20   ;;  %p976_p12 = pnand %p975_p11, %p1110_p5  ;;  %p983_p2 = por %p982_p1, %p981_p0 }
  0x21   : > { %925 = vmatpush3.bf16.msra.mxu0 %v922_v14  ;;  %929 = vmatpush3.bf16.msra.mxu1 %v922_v14  ;;  %p977_p13 = pneg %p976_p12 }
  0x23   : > { %530 = vperm.xlu1 %973, %v468_v25   ;;  %525 = vperm.xlu0 %972, %v467_v26   ;;  %v682_v25 = vld [vmem:[%s1316_s25 + $0x8] sm:$0xff]  ;;  %p984_p3 = pnand %p983_p2, %p977_p13 }
  0x24   : > { %895 = vmatmul.mubr.msk.f32.vlgmr.msra.gmra.mrb[0].mxu0 %vm263_vm0, %v244_v17  ;;  %907 = vmatmul.mubr.msk.f32.vlgmr.msra.gmra.mrb[0].mxu1 %vm263_vm0, %v252_v18  ;;  %v690_v26 = vld [vmem:[%s1316_s25 + $0x48] sm:$0xff] }
  0x25   : > { %897 = vmatprep.mubr.msk.f32.mxu0 %vm263_vm0, %v245_v21  ;;  %909 = vmatprep.mubr.msk.f32.mxu1 %vm263_vm0, %v253_v22 }
  0x27   : > { %540 = vperm.xlu1 %973, %v470_v31   ;;  %535 = vperm.xlu0 %972, %v469_v32   ;;  %v681_v31 = vld [vmem:[%s1316_s25] sm:$0xff] }
  0x28   : > { %898 = vmatmul.mubr.msk.f32.gmra.mrb[2].mxu0 %vm263_vm0, %v246_v23  ;;  %910 = vmatmul.mubr.msk.f32.gmra.mrb[2].mxu1 %vm263_vm0, %v254_v24  ;;  %v689_v32 = vld [vmem:[%s1316_s25 + $0x40] sm:$0xff] }
  0x29   : > { %900 = vmatprep.mubr.msk.f32.mxu0 %vm263_vm0, %v247_v27  ;;  %912 = vmatprep.mubr.msk.f32.mxu1 %vm263_vm0, %v255_v28 }
  0x2b   : > { %550 = vperm.xlu1 %973, %v472_v37   ;;  %545 = vperm.xlu0 %972, %v471_v38  }
  0x2c   : > { %901 = vmatmul.mubr.msk.f32.gmra.mrb[4].mxu0 %vm263_vm0, %v248_v29  ;;  %913 = vmatmul.mubr.msk.f32.gmra.mrb[4].mxu1 %vm263_vm0, %v256_v30 }
  0x2d   : > { %903 = vmatprep.mubr.msk.f32.mxu0 %vm263_vm0, %v249_v33  ;;  %915 = vmatprep.mubr.msk.f32.mxu1 %vm263_vm0, %v257_v34 }
  0x2f   : > { %592 = vperm.xlu1 %973, %v570_v39   ;;  %587 = vperm.xlu0 %972, %v569_v40  }
  0x30   : > { %904 = vmatmul.mubr.msk.f32.gmra.mrb[6].mxu0 %vm263_vm0, %v250_v35  ;;  %916 = vmatmul.mubr.msk.f32.gmra.mrb[6].mxu1 %vm263_vm0, %v258_v36 }
  0x33   : > { %602 = vperm.xlu1 %973, %v572_v41   ;;  %597 = vperm.xlu0 %972, %v571_v42  }
  0x37   : > { %612 = vperm.xlu1 %973, %v574_v43   ;;  %607 = vperm.xlu0 %972, %v573_v44  }
  0x3b   : > { %622 = vperm.xlu1 %973, %v576_v45   ;;  %617 = vperm.xlu0 %972, %v575_v46   ;;  %v684_v45 = vld [vmem:[%s1316_s25 + $0x18] sm:$0xff] }
  0x3c   : > { %v692_v46 = vld [vmem:[%s1316_s25 + $0x58] sm:$0xff] }
  0x3f   : > { %632 = vperm.xlu1 %973, %v578_v47   ;;  %627 = vperm.xlu0 %972, %v577_v48  }
  0x43   : > { %642 = vperm.xlu1 %973, %v580_v49   ;;  %637 = vperm.xlu0 %972, %v579_v50  }
  0x47   : > { %652 = vperm.xlu1 %973, %v582_v51   ;;  %647 = vperm.xlu0 %972, %v581_v52  }
  0x4b   : > { %662 = vperm.xlu1 %973, %v584_v53   ;;  %657 = vperm.xlu0 %972, %v583_v54  }
  0x8e   : > { %v486_v55 = vpop.permute.xlu1 %485  ;;  %v476_v56 = vpop.permute.xlu0 %475 }
  0x92   : > { %v491_v57 = vpop.permute.xlu1 %490  ;;  %v481_v58 = vpop.permute.xlu0 %480 }
  0x96   : > { %v1288_v59 = vpop.permute.xlu1 %500  ;;  %v1290_v60 = vpop.permute.xlu0 %495 }
  0x9a   : > { %v1292_v61 = vpop.permute.xlu1 %510  ;;  %v1294_v62 = vpop.permute.xlu0 %505 }
  0x9e   : > { %v521_v63 = vpop.permute.xlu1 %520  ;;  %v516_v0 = vpop.permute.xlu0 %515 }
  0xa2   : > { %v531_v1 = vpop.permute.xlu1 %530  ;;  %v526_v2 = vpop.permute.xlu0 %525 }
  0xa6   : > { %v1296_v3 = vpop.permute.xlu1 %540  ;;  %v1298_v4 = vpop.permute.xlu0 %535 }
  0xaa   : > { %v1300_v5 = vpop.permute.xlu1 %550  ;;  %v1302_v6 = vpop.permute.xlu0 %545 }
  0xae   : > { %v593_v7 = vpop.permute.xlu1 %592  ;;  %v588_v8 = vpop.permute.xlu0 %587 }
  0xb2   : > { %v603_v9 = vpop.permute.xlu1 %602  ;;  %v598_v10 = vpop.permute.xlu0 %597 }
  0xb6   : > { %v1304_v11 = vpop.permute.xlu1 %612  ;;  %v1306_v12 = vpop.permute.xlu0 %607 }
  0xba   : > { %v1308_v13 = vpop.permute.xlu1 %622  ;;  %v1310_v14 = vpop.permute.xlu0 %617 }
  0xbe   : > { %v633_v15 = vpop.permute.xlu1 %632  ;;  %v628_v16 = vpop.permute.xlu0 %627 }
  0xc2   : > { %v643_v17 = vpop.permute.xlu1 %642  ;;  %v638_v18 = vpop.permute.xlu0 %637 }
  0xc6   : > { %v653_v49 = vpop.permute.xlu1 %652  ;;  %v648_v50 = vpop.permute.xlu0 %647 }
  0xf7   : > { %v896_v19 = vpop.f32.mrb[0].mxu0  ;;  %v908_v20 = vpop.f32.mrb[0].mxu1 }
  0xf8   : > { %v554_v21 = vmul.f32 %v896_v19, %v481_v58  ;;  %v562_v22 = vmul.f32 %v908_v20, %v521_v63  ;;  %v378_v23 = vpop.f32.mrb[1].mxu0  ;;  %v418_v24 = vpop.f32.mrb[1].mxu1  ;;  %v686_v19 = vld [vmem:[%s1316_s25 + $0x28] sm:$0xff] }
  0xf9   : > { %v553_v27 = vmul.f32 %v476_v56, %v378_v23  ;;  %v561_v28 = vmul.f32 %v516_v0, %v418_v24  ;;  %v683_v56 = vld [vmem:[%s1316_s25 + $0x10] sm:$0xff]  ;;  %v694_v20 = vld [vmem:[%s1316_s25 + $0x68] sm:$0xff] }
  0xfa   : > { %v666_v29 = vadd.f32 %v593_v7, %v554_v21  ;;  %v674_v30 = vadd.f32 %v633_v15, %v562_v22 }
  0xfb   : > { %v665_v33 = vadd.f32 %v588_v8, %v553_v27  ;;  %v673_v34 = vadd.f32 %v628_v16, %v561_v28  ;;  %v899_v35 = vpop.f32.mrb[2].mxu0  ;;  %v911_v36 = vpop.f32.mrb[2].mxu1 }
  0xfc   : > { %v698_v37 = vadd.f32 %v682_v25, %v666_v29  ;;  %v706_v38 = vadd.f32 %v690_v26, %v674_v30  ;;  %v556_v39 = vmul.f32 %v899_v35, %v491_v57  ;;  %v564_v40 = vmul.f32 %v911_v36, %v531_v1  ;;  %v388_v41 = vpop.f32.mrb[3].mxu0  ;;  %v428_v42 = vpop.f32.mrb[3].mxu1  ;;  %v691_v57 = vld [vmem:[%s1316_s25 + $0x50] sm:$0xff]  ;;  %v685_v25 = vld [vmem:[%s1316_s25 + $0x20] sm:$0xff] }
  0xfd   : > { %v697_v43 = vadd.f32 %v681_v31, %v665_v33  ;;  %v705_v44 = vadd.f32 %v689_v32, %v673_v34  ;;  %v555_v47 = vmul.f32 %v486_v55, %v388_v41  ;;  %v563_v48 = vmul.f32 %v526_v2, %v428_v42  ;;  %v693_v26 = vld [vmem:[%s1316_s25 + $0x60] sm:$0xff]  ;;  %v663_v36 = vpop.permute.xlu1 %662 }
  0xfe   : > { %v714_v51 = vmax.f32 %v698_v37, 0.0  ;;  %v722_v52 = vmax.f32 %v706_v38, 0.0  ;;  %v668_v53 = vadd.f32 %v603_v9, %v556_v39  ;;  %v676_v54 = vadd.f32 %v643_v17, %v564_v40  ;;  %v688_v38 = vld [vmem:[%s1316_s25 + $0x38] sm:$0xff] }
  0xff   : > { %v713_v58 = vmax.f32 %v697_v43, 0.0  ;;  %v721_v63 = vmax.f32 %v705_v44, 0.0  ;;  %v667_v0 = vadd.f32 %v598_v10, %v555_v47  ;;  %v675_v1 = vadd.f32 %v638_v18, %v563_v48  ;;  %v902_v7 = vpop.f32.mrb[4].mxu0  ;;  %v914_v8 = vpop.f32.mrb[4].mxu1  ;;  %v696_v39 = vld [vmem:[%s1316_s25 + $0x78] sm:$0xff] }
 0x100   : > { %730 = vst [vmem:[%s1332_s30 + $0x8] sm:$0xff] %v714_v51  ;;  %738 = vst [vmem:[%s1332_s30 + $0x48] sm:$0xff] %v722_v52  ;;  %v700_v55 = vadd.f32 %v684_v45, %v668_v53  ;;  %v708_v2 = vadd.f32 %v692_v46, %v676_v54  ;;  %v558_v9 = vmul.f32 %v902_v7, %v1288_v59  ;;  %v398_v15 = vpop.f32.mrb[5].mxu0  ;;  %v438_v16 = vpop.f32.mrb[5].mxu1  ;;  %v687_v45 = vld [vmem:[%s1316_s25 + $0x30] sm:$0xff] }
 0x101   : > { %v566_v10 = vmul.f32 %v914_v8, %v1296_v3  ;;  %729 = vst [vmem:[%s1332_s30] sm:$0xff] %v713_v58  ;;  %737 = vst [vmem:[%s1332_s30 + $0x40] sm:$0xff] %v721_v63  ;;  %v699_v17 = vadd.f32 %v683_v56, %v667_v0  ;;  %v707_v18 = vadd.f32 %v691_v57, %v675_v1  ;;  %v695_v46 = vld [vmem:[%s1316_s25 + $0x70] sm:$0xff] }
 0x102   : > { %v557_v21 = vmul.f32 %v1290_v60, %v398_v15  ;;  %v565_v22 = vmul.f32 %v1298_v4, %v438_v16  ;;  %v716_v23 = vmax.f32 %v700_v55, 0.0  ;;  %v724_v59 = vmax.f32 %v708_v2, 0.0 }
 0x103   : > { %v670_v24 = vadd.f32 %v1304_v11, %v558_v9  ;;  %v678_v3 = vadd.f32 %v653_v49, %v566_v10  ;;  %v715_v27 = vmax.f32 %v699_v17, 0.0  ;;  %v723_v28 = vmax.f32 %v707_v18, 0.0  ;;  %v905_v31 = vpop.f32.mrb[6].mxu0  ;;  %v917_v60 = vpop.f32.mrb[6].mxu1 }
 0x104   : > { %v669_v29 = vadd.f32 %v1306_v12, %v557_v21  ;;  %v677_v30 = vadd.f32 %v648_v50, %v565_v22  ;;  %732 = vst [vmem:[%s1332_s30 + $0x18] sm:$0xff] %v716_v23  ;;  %740 = vst [vmem:[%s1332_s30 + $0x58] sm:$0xff] %v724_v59  ;;  %v560_v11 = vmul.f32 %v905_v31, %v1292_v61  ;;  %v408_v34 = vpop.f32.mrb[7].mxu0  ;;  %v448_v35 = vpop.f32.mrb[7].mxu1 }
 0x105   : > { %v702_v4 = vadd.f32 %v686_v19, %v670_v24  ;;  %v710_v32 = vadd.f32 %v694_v20, %v678_v3  ;;  %v568_v33 = vmul.f32 %v917_v60, %v1300_v5  ;;  %731 = vst [vmem:[%s1332_s30 + $0x10] sm:$0xff] %v715_v27  ;;  %739 = vst [vmem:[%s1332_s30 + $0x50] sm:$0xff] %v723_v28  ;;  %v658_v5 = vpop.permute.xlu0 %657 }
 0x106   : > { %v701_v12 = vadd.f32 %v685_v25, %v669_v29  ;;  %v709_v37 = vadd.f32 %v693_v26, %v677_v30  ;;  %v559_v40 = vmul.f32 %v1294_v62, %v408_v34  ;;  %v567_v61 = vmul.f32 %v1302_v6, %v448_v35 }
 0x107   : > { %v718_v41 = vmax.f32 %v702_v4, 0.0  ;;  %v726_v42 = vmax.f32 %v710_v32, 0.0  ;;  %v672_v43 = vadd.f32 %v1308_v13, %v560_v11  ;;  %v680_v44 = vadd.f32 %v663_v36, %v568_v33 }
 0x108   : > { %v717_v47 = vmax.f32 %v701_v12, 0.0  ;;  %v725_v48 = vmax.f32 %v709_v37, 0.0  ;;  %v671_v49 = vadd.f32 %v1310_v14, %v559_v40  ;;  %v679_v50 = vadd.f32 %v658_v5, %v567_v61 }
 0x109   : > { %734 = vst [vmem:[%s1332_s30 + $0x28] sm:$0xff] %v718_v41  ;;  %742 = vst [vmem:[%s1332_s30 + $0x68] sm:$0xff] %v726_v42  ;;  %v704_v62 = vadd.f32 %v688_v38, %v672_v43  ;;  %v712_v6 = vadd.f32 %v696_v39, %v680_v44 }
 0x10a   : > { %733 = vst [vmem:[%s1332_s30 + $0x20] sm:$0xff] %v717_v47  ;;  %741 = vst [vmem:[%s1332_s30 + $0x60] sm:$0xff] %v725_v48  ;;  %v703_v13 = vadd.f32 %v687_v45, %v671_v49  ;;  %v711_v51 = vadd.f32 %v695_v46, %v679_v50 }
 0x10b   : > { %v720_v52 = vmax.f32 %v704_v62, 0.0  ;;  %v728_v53 = vmax.f32 %v712_v6, 0.0 }
 0x10c   : > { %v719_v14 = vmax.f32 %v703_v13, 0.0  ;;  %v727_v54 = vmax.f32 %v711_v51, 0.0 }
 0x10d   : > { %736 = vst [vmem:[%s1332_s30 + $0x38] sm:$0xff] %v720_v52  ;;  %744 = vst [vmem:[%s1332_s30 + $0x78] sm:$0xff] %v728_v53 }
 0x10e   : > { %735 = vst [vmem:[%s1332_s30 + $0x30] sm:$0xff] %v719_v14  ;;  %743 = vst [vmem:[%s1332_s30 + $0x70] sm:$0xff] %v727_v54 }
 0x10f   : > { %987 = shalt.err (!%p984_p3)
}
 0x110   : > { %s988_s16 = scalar_lea.hbm %s1371_s22, 2048  ;;  %s992_s25 = scalar_lea.hbm %s1427_s5, 4096 }
 0x111   : > { %p989_p4 = scmp.ne.s32.totalorder %s1371_s22, %s988_s16  ;;  %p993_p9 = scmp.lt.u32.totalorder %s1371_s22, %s1427_s5 }
 0x112   : > { %p994_p10 = scmp.lt.u32.totalorder %s992_s25, %s988_s16  ;;  %p996_p12 = scmp.lt.u32.totalorder %s988_s16, %s1371_s22 }
 0x113   : > { %p990_p7 = pnand %p989_p4, %p1110_p5 }
 0x114   : > { %p995_p11 = por %p994_p10, %p993_p9 }
 0x115   : > { %p991_p8 = pneg %p990_p7 }
 0x116   : > { %p997_p13 = por %p996_p12, %p995_p11 }
 0x118   : > { %p998_p0 = pnand %p997_p13, %p991_p8 }
 0x11a   : > { %1001 = shalt.err (!%p998_p0)
}
 0x11b   : > { %s1040_s30 = smov 128   ;;  %s1041_s6 = smov 8  }
 0x11c   : > { %930 = dma.vmem_to_hbm [thread:$0]  (%p1110_p5), %s1373_s7, 2048, %s1371_s22, %s1381_s11, %s1040_s30, %s1040_s30, %s1041_s6  }
 0x11d PF: > { %p936_p1 = scmp.ge.s32.totalorder %s1036_s21, 2  ;;  %s774_s8 = sand.u32 1, %s1024_s18  }
 0x11e   : > { %s775_s10 = scalar_lea.sflag [#allocation3], %s774_s8 }
 0x11f   : > { %p933_p2 = pnand %p936_p1, %p1114_p6 }
 0x121   : > { %1019 = dma.done.wait (!%p933_p2), %s775_s10, 2048  }
 0x122   : > { %1021 = vsyncadd (!%p933_p2), %s775_s10, 4294965248  ;;  %p15_p3 = scmp.ge.s32.totalorder %s1097_s24, 4   ;;  %s1430_s18 = smov %s1028_s19 }
 0x123   : > { %s1431_s19 = smov %s1032_s20  ;;  %s1432_s20 = smov %s1108_s27 }
 0x124   : > { %s1433_s21 = smov %s1097_s24  ;;  %17 = sbr.rel (!%p15_p3) target bundleno = 3 (0x3), region = 78 }
 0x12b   :  { %780 = vsyncpa [#allocation3], 1 }
 0x12c   :  { %782 = vsyncpa [#allocation3 + $0x1], 1 }

</bundles_post_ra>
